<compile_context>
chip_gen: v5e
topology: v5e:2x2
jax: 0.10.0
libtpu: 0.0.40
codegen_flags: <defaults>
</compile_context>

<pallas_src>
import functools

import jax
import jax.numpy as jnp
import numpy as np
from jax.experimental import pallas as pl
from jax.experimental.pallas import tpu as pltpu  # noqa: F401  (TPU backend)

NEG_LARGE = -10000.0


def crf_viterbi_kernel(emit_ref, trans_ref, path_ref, score_ref, *, stop_idx):
    """Viterbi forward + in-kernel backtrace, mirroring CRF.forward.

    emit_ref  : (T, L) f32 VMEM   emissions, time-major
    trans_ref : (L, L) f32 VMEM   trans[i, j] = score of tag i -> tag j
    path_ref  : (1, T) i32 VMEM   decoded best path (lane-dense, single store)
    score_ref : (1, 1) f32 VMEM   exp(logsumexp(final)), as in the torch module
    """
    T, L = emit_ref.shape

    # One-time loads; everything below works on traced values (no per-step vld).
    emit = emit_ref[...]          # (T, L)
    trans = trans_ref[...]        # (L, L)

    lane_iota_row = jax.lax.broadcasted_iota(jnp.int32, (1, L), 1)   # lanes
    sub_iota_col = jax.lax.broadcasted_iota(jnp.int32, (L, 1), 0)    # sublanes
    sub_iota_ll = jax.lax.broadcasted_iota(jnp.int32, (L, L), 0)
    lane_iota_ll = jax.lax.broadcasted_iota(jnp.int32, (L, L), 1)
    lane_iota_t = jax.lax.broadcasted_iota(jnp.int32, (1, T), 1)
    diag_ll = sub_iota_ll == lane_iota_ll

    def row_to_col(row):
        # (1, L) -> (L, 1): relayout a lane-row onto sublanes via a one-hot
        # masked broadcast + exact sum.  Depends only on kernel inputs (never
        # on alpha), so the scheduler hoists it off the serial critical path.
        return jnp.sum(jnp.where(diag_ll, row, 0.0), axis=1, keepdims=True)

    # trans_t[j, i] = trans[i, j], built once in-kernel (no extra DMA input,
    # no standalone transpose lowering needed).  One-time setup work.
    trans_t = jnp.zeros((L, L), jnp.float32)
    for c in range(L):
        trans_t = jnp.where(lane_iota_ll == c,
                            row_to_col(trans[c:c + 1, :]), trans_t)

    # alphas init (column orientation): -10000 everywhere, 0 at the STOP tag.
    alpha = jnp.where(sub_iota_col == stop_idx, 0.0, NEG_LARGE).astype(jnp.float32)
    alpha_is_col = True

    # Fully unrolled forward recurrence (T is static); backtraces stay as a
    # handful of (1,L)/(L,1) traced vregs.
    # TODO(synk): for T beyond a few dozen steps, stream backtraces through a
    # (T, 128) int32 VMEM scratch instead of keeping them all live in vregs.
    backtraces = []   # list of (orientation, int32 array)
    for t in range(T):
        if alpha_is_col:
            # m[i, j] = alpha[i] + emit[t, j] + trans[i, j]; reduce over sublanes i.
            e_row = emit[t:t + 1, :]                                  # (1, L)
            m = alpha + e_row + trans                                 # (L, L)
            maxs = jnp.max(m, axis=0, keepdims=True)                  # (1, L)
            amax = jnp.min(jnp.where(m == maxs, sub_iota_ll, L),
                           axis=0, keepdims=True)                     # (1, L)
            backtraces.append(("row", amax))
            alpha = jnp.log(jnp.sum(jnp.exp(m - maxs),
                                    axis=0, keepdims=True)) + maxs    # (1, L)
            alpha_is_col = False
        else:
            # mT[j, i] = alpha[i] + emit[t, j] + trans[i, j]; reduce over lanes i.
            e_col = row_to_col(emit[t:t + 1, :])                      # (L, 1)
            m_t = alpha + e_col + trans_t                             # (L, L)
            maxs = jnp.max(m_t, axis=1, keepdims=True)                # (L, 1)
            amax = jnp.min(jnp.where(m_t == maxs, lane_iota_ll, L),
                           axis=1, keepdims=True)                     # (L, 1)
            backtraces.append(("col", amax))
            alpha = jnp.log(jnp.sum(jnp.exp(m_t - maxs),
                                    axis=1, keepdims=True)) + maxs    # (L, 1)
            alpha_is_col = True

    # final[i] = alpha[i] + trans[i, stop]   (static slices of traced values)
    if alpha_is_col:
        final = alpha + trans[:, stop_idx:stop_idx + 1]               # (L, 1)
        red_axis, iota = 0, sub_iota_col
    else:
        final = alpha + trans_t[stop_idx:stop_idx + 1, :]             # (1, L)
        red_axis, iota = 1, lane_iota_row

    fmax = jnp.max(final, axis=red_axis, keepdims=True)               # (1, 1)
    best = jnp.min(jnp.where(final == fmax, iota, L),
                   axis=red_axis, keepdims=True)                      # (1, 1) i32
    lse = jnp.log(jnp.sum(jnp.exp(final - fmax),
                          axis=red_axis, keepdims=True)) + fmax       # (1, 1)
    score_ref[...] = jnp.exp(lse)

    # In-kernel backtrace walk — fully unrolled, vector-domain one-hot selects.
    # Path accumulated in-register as a lane-dense (1, T) vector; one store.
    cur = best                                                        # (1, 1) i32
    path_vec = jnp.where(lane_iota_t == T - 1,
                         jnp.broadcast_to(cur, (1, T)),
                         jnp.zeros((1, T), jnp.int32))
    for t in range(T - 1, 0, -1):
        orient, bt = backtraces[t]
        if orient == "row":
            onehot = lane_iota_row == jnp.broadcast_to(cur, (1, L))
            cur = jnp.max(jnp.where(onehot, bt, -1), axis=1, keepdims=True)
        else:
            onehot = sub_iota_col == jnp.broadcast_to(cur, (L, 1))
            cur = jnp.max(jnp.where(onehot, bt, -1), axis=0, keepdims=True)
        path_vec = jnp.where(lane_iota_t == t - 1,
                             jnp.broadcast_to(cur, (1, T)), path_vec)
    path_ref[...] = path_vec


@functools.partial(jax.jit, static_argnames=("stop_idx", "show_score"))
def crf_forward(emit_scores, trans_matrix, stop_idx, show_score=True):
    """Pallas-backed equivalent of CRF.forward(emitScores, showScore)."""
    T, L = emit_scores.shape
    emit = emit_scores.astype(jnp.float32)
    trans = trans_matrix.astype(jnp.float32)

    path, score = pl.pallas_call(
        functools.partial(crf_viterbi_kernel, stop_idx=int(stop_idx)),
        out_shape=(
            jax.ShapeDtypeStruct((1, T), jnp.int32),
            jax.ShapeDtypeStruct((1, 1), jnp.float32),
        ),
        cost_estimate=pl.CostEstimate(
            flops=6 * T * L * L,
            transcendentals=T * (L * L + L) + L + 2,
            bytes_accessed=4 * (T * L + L * L + T + 1),
        ),
    )(emit, trans)

    path = path.reshape(T)
    if show_score:
        return score, path
    return path


def crf_forward_ref(emit_scores, trans_matrix, stop_idx):
    """NumPy transcription of the PyTorch CRF.forward for verification."""
    emit = np.asarray(emit_scores, dtype=np.float32)
    trans = np.asarray(trans_matrix, dtype=np.float32)
    T, L = emit.shape

    def lse(v):
        mx = v.max(0, keepdims=True)
        return np.log(np.exp(v - mx).sum(0, keepdims=True)) + mx

    alphas = np.full((1, L), NEG_LARGE, dtype=np.float32)
    alphas[0, stop_idx] = 0.0
    backtraces = []
    for t in range(T):
        M = alphas.T + emit[t][None, :] + trans
        backtraces.append(np.argmax(M, axis=0))
        alphas = lse(M)
    final = alphas.T + trans[:, [stop_idx]]
    best = [int(final.flatten().argmax())]
    for tr in reversed(backtraces[1:]):
        best.append(int(tr[best[-1]]))
    best.reverse()
    score = np.exp(lse(final))  # (1, 1)
    return score, best


if __name__ == "__main__":
    # Deterministic synthetic setup (no checkpoint loading).
    label_encode_dict = {
        "B-PER": 0, "I-PER": 1, "B-LOC": 2, "I-LOC": 3,
        "O": 4, "X": 5, "<START>": 6, "<STOP>": 7,
    }
    label_length = len(label_encode_dict)   # L = 8
    stop_idx = label_encode_dict["<STOP>"]
    seq_len = 10                            # T = 10

    key = jax.random.PRNGKey(0)
    k_trans, k_emit = jax.random.split(key)
    trans_matrix = jax.random.normal(k_trans, (label_length, label_length), jnp.float32)
    emit_scores = jax.random.normal(k_emit, (seq_len, label_length), jnp.float32)

    score, path = crf_forward(emit_scores, trans_matrix, stop_idx, show_score=True)
    score = jax.block_until_ready(score)
    path = jax.block_until_ready(path)

    ref_score, ref_path = crf_forward_ref(emit_scores, trans_matrix, stop_idx)
    assert [int(p) for p in np.asarray(path)] == ref_path, (path, ref_path)
    assert np.allclose(np.asarray(score), ref_score, rtol=1e-3, atol=1e-3), (score, ref_score)

    print("KERNEL_OK")
</pallas_src>

<mosaic_0001>
module attributes {stable_mosaic.version = 11 : i64} {
  func.func @crf_viterbi_kernel(%arg0: memref<10x8xf32, #tpu.memory_space<vmem>>, %arg1: memref<8x8xf32, #tpu.memory_space<vmem>>, %arg2: memref<1x10xi32, #tpu.memory_space<vmem>>, %arg3: memref<1x1xf32, #tpu.memory_space<vmem>>) attributes {dimension_semantics = [], scalar_prefetch = 0 : i64, scratch_operands = 0 : i64, tpu.core_type = #tpu.core_type<tc>} {
    %c0 = arith.constant 0 : index
    %c0_0 = arith.constant 0 : index
    %0 = vector.load %arg0[%c0, %c0_0] : memref<10x8xf32, #tpu.memory_space<vmem>>, vector<10x8xf32>
    %c0_1 = arith.constant 0 : index
    %c0_2 = arith.constant 0 : index
    %1 = vector.load %arg1[%c0_1, %c0_2] : memref<8x8xf32, #tpu.memory_space<vmem>>, vector<8x8xf32>
    %2 = tpu.iota {dimensions = array<i32: 1>} : vector<1x8xi32>
    %3 = tpu.iota {dimensions = array<i32: 0>} : vector<8x1xi32>
    %4 = tpu.iota {dimensions = array<i32: 0>} : vector<8x8xi32>
    %5 = tpu.iota {dimensions = array<i32: 1>} : vector<8x8xi32>
    %6 = tpu.iota {dimensions = array<i32: 1>} : vector<1x10xi32>
    %7 = arith.cmpi eq, %4, %5 : vector<8x8xi32>
    %cst = arith.constant 0.000000e+00 : f32
    %8 = vector.broadcast %cst : f32 to vector<8x8xf32>
    %c0_i32 = arith.constant 0 : i32
    %9 = vector.broadcast %c0_i32 : i32 to vector<8x8xi32>
    %10 = arith.cmpi eq, %5, %9 : vector<8x8xi32>
    %11 = vector.extract_strided_slice %1 {offsets = [0, 0], sizes = [1, 8], strides = [1, 1]} : vector<8x8xf32> to vector<1x8xf32>
    %cst_3 = arith.constant 0.000000e+00 : f32
    %12 = vector.shape_cast %11 : vector<1x8xf32> to vector<1x8xf32>
    %13 = vector.broadcast %12 : vector<1x8xf32> to vector<8x8xf32>
    %14 = vector.broadcast %cst_3 : f32 to vector<8x8xf32>
    %15 = arith.select %7, %13, %14 : vector<8x8xi1>, vector<8x8xf32>
    %cst_4 = arith.constant dense<0.000000e+00> : vector<8xf32>
    %16 = vector.multi_reduction <add>, %15, %cst_4 [1] : vector<8x8xf32> to vector<8xf32>
    %17 = vector.shape_cast %16 : vector<8xf32> to vector<8x1xf32>
    %18 = vector.shape_cast %17 : vector<8x1xf32> to vector<8x1xf32>
    %19 = vector.broadcast %18 : vector<8x1xf32> to vector<8x8xf32>
    %20 = arith.select %10, %19, %8 : vector<8x8xi1>, vector<8x8xf32>
    %c1_i32 = arith.constant 1 : i32
    %21 = vector.broadcast %c1_i32 : i32 to vector<8x8xi32>
    %22 = arith.cmpi eq, %5, %21 : vector<8x8xi32>
    %23 = vector.extract_strided_slice %1 {offsets = [1, 0], sizes = [1, 8], strides = [1, 1]} : vector<8x8xf32> to vector<1x8xf32>
    %cst_5 = arith.constant 0.000000e+00 : f32
    %24 = vector.shape_cast %23 : vector<1x8xf32> to vector<1x8xf32>
    %25 = vector.broadcast %24 : vector<1x8xf32> to vector<8x8xf32>
    %26 = vector.broadcast %cst_5 : f32 to vector<8x8xf32>
    %27 = arith.select %7, %25, %26 : vector<8x8xi1>, vector<8x8xf32>
    %cst_6 = arith.constant dense<0.000000e+00> : vector<8xf32>
    %28 = vector.multi_reduction <add>, %27, %cst_6 [1] : vector<8x8xf32> to vector<8xf32>
    %29 = vector.shape_cast %28 : vector<8xf32> to vector<8x1xf32>
    %30 = vector.shape_cast %29 : vector<8x1xf32> to vector<8x1xf32>
    %31 = vector.broadcast %30 : vector<8x1xf32> to vector<8x8xf32>
    %32 = arith.select %22, %31, %20 : vector<8x8xi1>, vector<8x8xf32>
    %c2_i32 = arith.constant 2 : i32
    %33 = vector.broadcast %c2_i32 : i32 to vector<8x8xi32>
    %34 = arith.cmpi eq, %5, %33 : vector<8x8xi32>
    %35 = vector.extract_strided_slice %1 {offsets = [2, 0], sizes = [1, 8], strides = [1, 1]} : vector<8x8xf32> to vector<1x8xf32>
    %cst_7 = arith.constant 0.000000e+00 : f32
    %36 = vector.shape_cast %35 : vector<1x8xf32> to vector<1x8xf32>
    %37 = vector.broadcast %36 : vector<1x8xf32> to vector<8x8xf32>
    %38 = vector.broadcast %cst_7 : f32 to vector<8x8xf32>
    %39 = arith.select %7, %37, %38 : vector<8x8xi1>, vector<8x8xf32>
    %cst_8 = arith.constant dense<0.000000e+00> : vector<8xf32>
    %40 = vector.multi_reduction <add>, %39, %cst_8 [1] : vector<8x8xf32> to vector<8xf32>
    %41 = vector.shape_cast %40 : vector<8xf32> to vector<8x1xf32>
    %42 = vector.shape_cast %41 : vector<8x1xf32> to vector<8x1xf32>
    %43 = vector.broadcast %42 : vector<8x1xf32> to vector<8x8xf32>
    %44 = arith.select %34, %43, %32 : vector<8x8xi1>, vector<8x8xf32>
    %c3_i32 = arith.constant 3 : i32
    %45 = vector.broadcast %c3_i32 : i32 to vector<8x8xi32>
    %46 = arith.cmpi eq, %5, %45 : vector<8x8xi32>
    %47 = vector.extract_strided_slice %1 {offsets = [3, 0], sizes = [1, 8], strides = [1, 1]} : vector<8x8xf32> to vector<1x8xf32>
    %cst_9 = arith.constant 0.000000e+00 : f32
    %48 = vector.shape_cast %47 : vector<1x8xf32> to vector<1x8xf32>
    %49 = vector.broadcast %48 : vector<1x8xf32> to vector<8x8xf32>
    %50 = vector.broadcast %cst_9 : f32 to vector<8x8xf32>
    %51 = arith.select %7, %49, %50 : vector<8x8xi1>, vector<8x8xf32>
    %cst_10 = arith.constant dense<0.000000e+00> : vector<8xf32>
    %52 = vector.multi_reduction <add>, %51, %cst_10 [1] : vector<8x8xf32> to vector<8xf32>
    %53 = vector.shape_cast %52 : vector<8xf32> to vector<8x1xf32>
    %54 = vector.shape_cast %53 : vector<8x1xf32> to vector<8x1xf32>
    %55 = vector.broadcast %54 : vector<8x1xf32> to vector<8x8xf32>
    %56 = arith.select %46, %55, %44 : vector<8x8xi1>, vector<8x8xf32>
    %c4_i32 = arith.constant 4 : i32
    %57 = vector.broadcast %c4_i32 : i32 to vector<8x8xi32>
    %58 = arith.cmpi eq, %5, %57 : vector<8x8xi32>
    %59 = vector.extract_strided_slice %1 {offsets = [4, 0], sizes = [1, 8], strides = [1, 1]} : vector<8x8xf32> to vector<1x8xf32>
    %cst_11 = arith.constant 0.000000e+00 : f32
    %60 = vector.shape_cast %59 : vector<1x8xf32> to vector<1x8xf32>
    %61 = vector.broadcast %60 : vector<1x8xf32> to vector<8x8xf32>
    %62 = vector.broadcast %cst_11 : f32 to vector<8x8xf32>
    %63 = arith.select %7, %61, %62 : vector<8x8xi1>, vector<8x8xf32>
    %cst_12 = arith.constant dense<0.000000e+00> : vector<8xf32>
    %64 = vector.multi_reduction <add>, %63, %cst_12 [1] : vector<8x8xf32> to vector<8xf32>
    %65 = vector.shape_cast %64 : vector<8xf32> to vector<8x1xf32>
    %66 = vector.shape_cast %65 : vector<8x1xf32> to vector<8x1xf32>
    %67 = vector.broadcast %66 : vector<8x1xf32> to vector<8x8xf32>
    %68 = arith.select %58, %67, %56 : vector<8x8xi1>, vector<8x8xf32>
    %c5_i32 = arith.constant 5 : i32
    %69 = vector.broadcast %c5_i32 : i32 to vector<8x8xi32>
    %70 = arith.cmpi eq, %5, %69 : vector<8x8xi32>
    %71 = vector.extract_strided_slice %1 {offsets = [5, 0], sizes = [1, 8], strides = [1, 1]} : vector<8x8xf32> to vector<1x8xf32>
    %cst_13 = arith.constant 0.000000e+00 : f32
    %72 = vector.shape_cast %71 : vector<1x8xf32> to vector<1x8xf32>
    %73 = vector.broadcast %72 : vector<1x8xf32> to vector<8x8xf32>
    %74 = vector.broadcast %cst_13 : f32 to vector<8x8xf32>
    %75 = arith.select %7, %73, %74 : vector<8x8xi1>, vector<8x8xf32>
    %cst_14 = arith.constant dense<0.000000e+00> : vector<8xf32>
    %76 = vector.multi_reduction <add>, %75, %cst_14 [1] : vector<8x8xf32> to vector<8xf32>
    %77 = vector.shape_cast %76 : vector<8xf32> to vector<8x1xf32>
    %78 = vector.shape_cast %77 : vector<8x1xf32> to vector<8x1xf32>
    %79 = vector.broadcast %78 : vector<8x1xf32> to vector<8x8xf32>
    %80 = arith.select %70, %79, %68 : vector<8x8xi1>, vector<8x8xf32>
    %c6_i32 = arith.constant 6 : i32
    %81 = vector.broadcast %c6_i32 : i32 to vector<8x8xi32>
    %82 = arith.cmpi eq, %5, %81 : vector<8x8xi32>
    %83 = vector.extract_strided_slice %1 {offsets = [6, 0], sizes = [1, 8], strides = [1, 1]} : vector<8x8xf32> to vector<1x8xf32>
    %cst_15 = arith.constant 0.000000e+00 : f32
    %84 = vector.shape_cast %83 : vector<1x8xf32> to vector<1x8xf32>
    %85 = vector.broadcast %84 : vector<1x8xf32> to vector<8x8xf32>
    %86 = vector.broadcast %cst_15 : f32 to vector<8x8xf32>
    %87 = arith.select %7, %85, %86 : vector<8x8xi1>, vector<8x8xf32>
    %cst_16 = arith.constant dense<0.000000e+00> : vector<8xf32>
    %88 = vector.multi_reduction <add>, %87, %cst_16 [1] : vector<8x8xf32> to vector<8xf32>
    %89 = vector.shape_cast %88 : vector<8xf32> to vector<8x1xf32>
    %90 = vector.shape_cast %89 : vector<8x1xf32> to vector<8x1xf32>
    %91 = vector.broadcast %90 : vector<8x1xf32> to vector<8x8xf32>
    %92 = arith.select %82, %91, %80 : vector<8x8xi1>, vector<8x8xf32>
    %c7_i32 = arith.constant 7 : i32
    %93 = vector.broadcast %c7_i32 : i32 to vector<8x8xi32>
    %94 = arith.cmpi eq, %5, %93 : vector<8x8xi32>
    %95 = vector.extract_strided_slice %1 {offsets = [7, 0], sizes = [1, 8], strides = [1, 1]} : vector<8x8xf32> to vector<1x8xf32>
    %cst_17 = arith.constant 0.000000e+00 : f32
    %96 = vector.shape_cast %95 : vector<1x8xf32> to vector<1x8xf32>
    %97 = vector.broadcast %96 : vector<1x8xf32> to vector<8x8xf32>
    %98 = vector.broadcast %cst_17 : f32 to vector<8x8xf32>
    %99 = arith.select %7, %97, %98 : vector<8x8xi1>, vector<8x8xf32>
    %cst_18 = arith.constant dense<0.000000e+00> : vector<8xf32>
    %100 = vector.multi_reduction <add>, %99, %cst_18 [1] : vector<8x8xf32> to vector<8xf32>
    %101 = vector.shape_cast %100 : vector<8xf32> to vector<8x1xf32>
    %102 = vector.shape_cast %101 : vector<8x1xf32> to vector<8x1xf32>
    %103 = vector.broadcast %102 : vector<8x1xf32> to vector<8x8xf32>
    %104 = arith.select %94, %103, %92 : vector<8x8xi1>, vector<8x8xf32>
    %c7_i32_19 = arith.constant 7 : i32
    %105 = vector.broadcast %c7_i32_19 : i32 to vector<8x1xi32>
    %106 = arith.cmpi eq, %3, %105 : vector<8x1xi32>
    %cst_20 = arith.constant 0.000000e+00 : f32
    %cst_21 = arith.constant -1.000000e+04 : f32
    %107 = vector.broadcast %cst_20 : f32 to vector<8x1xf32>
    %108 = vector.broadcast %cst_21 : f32 to vector<8x1xf32>
    %109 = arith.select %106, %107, %108 : vector<8x1xi1>, vector<8x1xf32>
    %110 = vector.extract_strided_slice %0 {offsets = [0, 0], sizes = [1, 8], strides = [1, 1]} : vector<10x8xf32> to vector<1x8xf32>
    %111 = vector.broadcast %109 : vector<8x1xf32> to vector<8x8xf32>
    %112 = vector.broadcast %110 : vector<1x8xf32> to vector<8x8xf32>
    %113 = arith.addf %111, %112 : vector<8x8xf32>
    %114 = arith.addf %113, %1 : vector<8x8xf32>
    %cst_22 = arith.constant dense<0xFF800000> : vector<8xf32>
    %115 = vector.multi_reduction <maximumf>, %114, %cst_22 [0] : vector<8x8xf32> to vector<8xf32>
    %116 = vector.shape_cast %115 : vector<8xf32> to vector<1x8xf32>
    %117 = vector.broadcast %116 : vector<1x8xf32> to vector<8x8xf32>
    %118 = arith.subf %114, %117 : vector<8x8xf32>
    %119 = math.exp %118 : vector<8x8xf32>
    %cst_23 = arith.constant dense<0.000000e+00> : vector<8xf32>
    %120 = vector.multi_reduction <add>, %119, %cst_23 [0] : vector<8x8xf32> to vector<8xf32>
    %121 = vector.shape_cast %120 : vector<8xf32> to vector<1x8xf32>
    %122 = math.log %121 : vector<1x8xf32>
    %123 = arith.addf %122, %116 : vector<1x8xf32>
    %124 = vector.extract_strided_slice %0 {offsets = [1, 0], sizes = [1, 8], strides = [1, 1]} : vector<10x8xf32> to vector<1x8xf32>
    %cst_24 = arith.constant 0.000000e+00 : f32
    %125 = vector.shape_cast %124 : vector<1x8xf32> to vector<1x8xf32>
    %126 = vector.broadcast %125 : vector<1x8xf32> to vector<8x8xf32>
    %127 = vector.broadcast %cst_24 : f32 to vector<8x8xf32>
    %128 = arith.select %7, %126, %127 : vector<8x8xi1>, vector<8x8xf32>
    %cst_25 = arith.constant dense<0.000000e+00> : vector<8xf32>
    %129 = vector.multi_reduction <add>, %128, %cst_25 [1] : vector<8x8xf32> to vector<8xf32>
    %130 = vector.shape_cast %129 : vector<8xf32> to vector<8x1xf32>
    %131 = vector.broadcast %123 : vector<1x8xf32> to vector<8x8xf32>
    %132 = vector.broadcast %130 : vector<8x1xf32> to vector<8x8xf32>
    %133 = arith.addf %131, %132 : vector<8x8xf32>
    %134 = arith.addf %133, %104 : vector<8x8xf32>
    %cst_26 = arith.constant dense<0xFF800000> : vector<8xf32>
    %135 = vector.multi_reduction <maximumf>, %134, %cst_26 [1] : vector<8x8xf32> to vector<8xf32>
    %136 = vector.shape_cast %135 : vector<8xf32> to vector<8x1xf32>
    %137 = vector.broadcast %136 : vector<8x1xf32> to vector<8x8xf32>
    %138 = arith.cmpf oeq, %134, %137 : vector<8x8xf32>
    %c8_i32 = arith.constant 8 : i32
    %139 = vector.broadcast %c8_i32 : i32 to vector<8x8xi32>
    %140 = arith.select %138, %5, %139 : vector<8x8xi1>, vector<8x8xi32>
    %cst_27 = arith.constant dense<2147483647> : vector<8xi32>
    %141 = vector.multi_reduction <minsi>, %140, %cst_27 [1] : vector<8x8xi32> to vector<8xi32>
    %142 = vector.shape_cast %141 : vector<8xi32> to vector<8x1xi32>
    %143 = vector.broadcast %136 : vector<8x1xf32> to vector<8x8xf32>
    %144 = arith.subf %134, %143 : vector<8x8xf32>
    %145 = math.exp %144 : vector<8x8xf32>
    %cst_28 = arith.constant dense<0.000000e+00> : vector<8xf32>
    %146 = vector.multi_reduction <add>, %145, %cst_28 [1] : vector<8x8xf32> to vector<8xf32>
    %147 = vector.shape_cast %146 : vector<8xf32> to vector<8x1xf32>
    %148 = math.log %147 : vector<8x1xf32>
    %149 = arith.addf %148, %136 : vector<8x1xf32>
    %150 = vector.extract_strided_slice %0 {offsets = [2, 0], sizes = [1, 8], strides = [1, 1]} : vector<10x8xf32> to vector<1x8xf32>
    %151 = vector.broadcast %149 : vector<8x1xf32> to vector<8x8xf32>
    %152 = vector.broadcast %150 : vector<1x8xf32> to vector<8x8xf32>
    %153 = arith.addf %151, %152 : vector<8x8xf32>
    %154 = arith.addf %153, %1 : vector<8x8xf32>
    %cst_29 = arith.constant dense<0xFF800000> : vector<8xf32>
    %155 = vector.multi_reduction <maximumf>, %154, %cst_29 [0] : vector<8x8xf32> to vector<8xf32>
    %156 = vector.shape_cast %155 : vector<8xf32> to vector<1x8xf32>
    %157 = vector.broadcast %156 : vector<1x8xf32> to vector<8x8xf32>
    %158 = arith.cmpf oeq, %154, %157 : vector<8x8xf32>
    %c8_i32_30 = arith.constant 8 : i32
    %159 = vector.broadcast %c8_i32_30 : i32 to vector<8x8xi32>
    %160 = arith.select %158, %4, %159 : vector<8x8xi1>, vector<8x8xi32>
    %cst_31 = arith.constant dense<2147483647> : vector<8xi32>
    %161 = vector.multi_reduction <minsi>, %160, %cst_31 [0] : vector<8x8xi32> to vector<8xi32>
    %162 = vector.shape_cast %161 : vector<8xi32> to vector<1x8xi32>
    %163 = vector.broadcast %156 : vector<1x8xf32> to vector<8x8xf32>
    %164 = arith.subf %154, %163 : vector<8x8xf32>
    %165 = math.exp %164 : vector<8x8xf32>
    %cst_32 = arith.constant dense<0.000000e+00> : vector<8xf32>
    %166 = vector.multi_reduction <add>, %165, %cst_32 [0] : vector<8x8xf32> to vector<8xf32>
    %167 = vector.shape_cast %166 : vector<8xf32> to vector<1x8xf32>
    %168 = math.log %167 : vector<1x8xf32>
    %169 = arith.addf %168, %156 : vector<1x8xf32>
    %170 = vector.extract_strided_slice %0 {offsets = [3, 0], sizes = [1, 8], strides = [1, 1]} : vector<10x8xf32> to vector<1x8xf32>
    %cst_33 = arith.constant 0.000000e+00 : f32
    %171 = vector.shape_cast %170 : vector<1x8xf32> to vector<1x8xf32>
    %172 = vector.broadcast %171 : vector<1x8xf32> to vector<8x8xf32>
    %173 = vector.broadcast %cst_33 : f32 to vector<8x8xf32>
    %174 = arith.select %7, %172, %173 : vector<8x8xi1>, vector<8x8xf32>
    %cst_34 = arith.constant dense<0.000000e+00> : vector<8xf32>
    %175 = vector.multi_reduction <add>, %174, %cst_34 [1] : vector<8x8xf32> to vector<8xf32>
    %176 = vector.shape_cast %175 : vector<8xf32> to vector<8x1xf32>
    %177 = vector.broadcast %169 : vector<1x8xf32> to vector<8x8xf32>
    %178 = vector.broadcast %176 : vector<8x1xf32> to vector<8x8xf32>
    %179 = arith.addf %177, %178 : vector<8x8xf32>
    %180 = arith.addf %179, %104 : vector<8x8xf32>
    %cst_35 = arith.constant dense<0xFF800000> : vector<8xf32>
    %181 = vector.multi_reduction <maximumf>, %180, %cst_35 [1] : vector<8x8xf32> to vector<8xf32>
    %182 = vector.shape_cast %181 : vector<8xf32> to vector<8x1xf32>
    %183 = vector.broadcast %182 : vector<8x1xf32> to vector<8x8xf32>
    %184 = arith.cmpf oeq, %180, %183 : vector<8x8xf32>
    %c8_i32_36 = arith.constant 8 : i32
    %185 = vector.broadcast %c8_i32_36 : i32 to vector<8x8xi32>
    %186 = arith.select %184, %5, %185 : vector<8x8xi1>, vector<8x8xi32>
    %cst_37 = arith.constant dense<2147483647> : vector<8xi32>
    %187 = vector.multi_reduction <minsi>, %186, %cst_37 [1] : vector<8x8xi32> to vector<8xi32>
    %188 = vector.shape_cast %187 : vector<8xi32> to vector<8x1xi32>
    %189 = vector.broadcast %182 : vector<8x1xf32> to vector<8x8xf32>
    %190 = arith.subf %180, %189 : vector<8x8xf32>
    %191 = math.exp %190 : vector<8x8xf32>
    %cst_38 = arith.constant dense<0.000000e+00> : vector<8xf32>
    %192 = vector.multi_reduction <add>, %191, %cst_38 [1] : vector<8x8xf32> to vector<8xf32>
    %193 = vector.shape_cast %192 : vector<8xf32> to vector<8x1xf32>
    %194 = math.log %193 : vector<8x1xf32>
    %195 = arith.addf %194, %182 : vector<8x1xf32>
    %196 = vector.extract_strided_slice %0 {offsets = [4, 0], sizes = [1, 8], strides = [1, 1]} : vector<10x8xf32> to vector<1x8xf32>
    %197 = vector.broadcast %195 : vector<8x1xf32> to vector<8x8xf32>
    %198 = vector.broadcast %196 : vector<1x8xf32> to vector<8x8xf32>
    %199 = arith.addf %197, %198 : vector<8x8xf32>
    %200 = arith.addf %199, %1 : vector<8x8xf32>
    %cst_39 = arith.constant dense<0xFF800000> : vector<8xf32>
    %201 = vector.multi_reduction <maximumf>, %200, %cst_39 [0] : vector<8x8xf32> to vector<8xf32>
    %202 = vector.shape_cast %201 : vector<8xf32> to vector<1x8xf32>
    %203 = vector.broadcast %202 : vector<1x8xf32> to vector<8x8xf32>
    %204 = arith.cmpf oeq, %200, %203 : vector<8x8xf32>
    %c8_i32_40 = arith.constant 8 : i32
    %205 = vector.broadcast %c8_i32_40 : i32 to vector<8x8xi32>
    %206 = arith.select %204, %4, %205 : vector<8x8xi1>, vector<8x8xi32>
    %cst_41 = arith.constant dense<2147483647> : vector<8xi32>
    %207 = vector.multi_reduction <minsi>, %206, %cst_41 [0] : vector<8x8xi32> to vector<8xi32>
    %208 = vector.shape_cast %207 : vector<8xi32> to vector<1x8xi32>
    %209 = vector.broadcast %202 : vector<1x8xf32> to vector<8x8xf32>
    %210 = arith.subf %200, %209 : vector<8x8xf32>
    %211 = math.exp %210 : vector<8x8xf32>
    %cst_42 = arith.constant dense<0.000000e+00> : vector<8xf32>
    %212 = vector.multi_reduction <add>, %211, %cst_42 [0] : vector<8x8xf32> to vector<8xf32>
    %213 = vector.shape_cast %212 : vector<8xf32> to vector<1x8xf32>
    %214 = math.log %213 : vector<1x8xf32>
    %215 = arith.addf %214, %202 : vector<1x8xf32>
    %216 = vector.extract_strided_slice %0 {offsets = [5, 0], sizes = [1, 8], strides = [1, 1]} : vector<10x8xf32> to vector<1x8xf32>
    %cst_43 = arith.constant 0.000000e+00 : f32
    %217 = vector.shape_cast %216 : vector<1x8xf32> to vector<1x8xf32>
    %218 = vector.broadcast %217 : vector<1x8xf32> to vector<8x8xf32>
    %219 = vector.broadcast %cst_43 : f32 to vector<8x8xf32>
    %220 = arith.select %7, %218, %219 : vector<8x8xi1>, vector<8x8xf32>
    %cst_44 = arith.constant dense<0.000000e+00> : vector<8xf32>
    %221 = vector.multi_reduction <add>, %220, %cst_44 [1] : vector<8x8xf32> to vector<8xf32>
    %222 = vector.shape_cast %221 : vector<8xf32> to vector<8x1xf32>
    %223 = vector.broadcast %215 : vector<1x8xf32> to vector<8x8xf32>
    %224 = vector.broadcast %222 : vector<8x1xf32> to vector<8x8xf32>
    %225 = arith.addf %223, %224 : vector<8x8xf32>
    %226 = arith.addf %225, %104 : vector<8x8xf32>
    %cst_45 = arith.constant dense<0xFF800000> : vector<8xf32>
    %227 = vector.multi_reduction <maximumf>, %226, %cst_45 [1] : vector<8x8xf32> to vector<8xf32>
    %228 = vector.shape_cast %227 : vector<8xf32> to vector<8x1xf32>
    %229 = vector.broadcast %228 : vector<8x1xf32> to vector<8x8xf32>
    %230 = arith.cmpf oeq, %226, %229 : vector<8x8xf32>
    %c8_i32_46 = arith.constant 8 : i32
    %231 = vector.broadcast %c8_i32_46 : i32 to vector<8x8xi32>
    %232 = arith.select %230, %5, %231 : vector<8x8xi1>, vector<8x8xi32>
    %cst_47 = arith.constant dense<2147483647> : vector<8xi32>
    %233 = vector.multi_reduction <minsi>, %232, %cst_47 [1] : vector<8x8xi32> to vector<8xi32>
    %234 = vector.shape_cast %233 : vector<8xi32> to vector<8x1xi32>
    %235 = vector.broadcast %228 : vector<8x1xf32> to vector<8x8xf32>
    %236 = arith.subf %226, %235 : vector<8x8xf32>
    %237 = math.exp %236 : vector<8x8xf32>
    %cst_48 = arith.constant dense<0.000000e+00> : vector<8xf32>
    %238 = vector.multi_reduction <add>, %237, %cst_48 [1] : vector<8x8xf32> to vector<8xf32>
    %239 = vector.shape_cast %238 : vector<8xf32> to vector<8x1xf32>
    %240 = math.log %239 : vector<8x1xf32>
    %241 = arith.addf %240, %228 : vector<8x1xf32>
    %242 = vector.extract_strided_slice %0 {offsets = [6, 0], sizes = [1, 8], strides = [1, 1]} : vector<10x8xf32> to vector<1x8xf32>
    %243 = vector.broadcast %241 : vector<8x1xf32> to vector<8x8xf32>
    %244 = vector.broadcast %242 : vector<1x8xf32> to vector<8x8xf32>
    %245 = arith.addf %243, %244 : vector<8x8xf32>
    %246 = arith.addf %245, %1 : vector<8x8xf32>
    %cst_49 = arith.constant dense<0xFF800000> : vector<8xf32>
    %247 = vector.multi_reduction <maximumf>, %246, %cst_49 [0] : vector<8x8xf32> to vector<8xf32>
    %248 = vector.shape_cast %247 : vector<8xf32> to vector<1x8xf32>
    %249 = vector.broadcast %248 : vector<1x8xf32> to vector<8x8xf32>
    %250 = arith.cmpf oeq, %246, %249 : vector<8x8xf32>
    %c8_i32_50 = arith.constant 8 : i32
    %251 = vector.broadcast %c8_i32_50 : i32 to vector<8x8xi32>
    %252 = arith.select %250, %4, %251 : vector<8x8xi1>, vector<8x8xi32>
    %cst_51 = arith.constant dense<2147483647> : vector<8xi32>
    %253 = vector.multi_reduction <minsi>, %252, %cst_51 [0] : vector<8x8xi32> to vector<8xi32>
    %254 = vector.shape_cast %253 : vector<8xi32> to vector<1x8xi32>
    %255 = vector.broadcast %248 : vector<1x8xf32> to vector<8x8xf32>
    %256 = arith.subf %246, %255 : vector<8x8xf32>
    %257 = math.exp %256 : vector<8x8xf32>
    %cst_52 = arith.constant dense<0.000000e+00> : vector<8xf32>
    %258 = vector.multi_reduction <add>, %257, %cst_52 [0] : vector<8x8xf32> to vector<8xf32>
    %259 = vector.shape_cast %258 : vector<8xf32> to vector<1x8xf32>
    %260 = math.log %259 : vector<1x8xf32>
    %261 = arith.addf %260, %248 : vector<1x8xf32>
    %262 = vector.extract_strided_slice %0 {offsets = [7, 0], sizes = [1, 8], strides = [1, 1]} : vector<10x8xf32> to vector<1x8xf32>
    %cst_53 = arith.constant 0.000000e+00 : f32
    %263 = vector.shape_cast %262 : vector<1x8xf32> to vector<1x8xf32>
    %264 = vector.broadcast %263 : vector<1x8xf32> to vector<8x8xf32>
    %265 = vector.broadcast %cst_53 : f32 to vector<8x8xf32>
    %266 = arith.select %7, %264, %265 : vector<8x8xi1>, vector<8x8xf32>
    %cst_54 = arith.constant dense<0.000000e+00> : vector<8xf32>
    %267 = vector.multi_reduction <add>, %266, %cst_54 [1] : vector<8x8xf32> to vector<8xf32>
    %268 = vector.shape_cast %267 : vector<8xf32> to vector<8x1xf32>
    %269 = vector.broadcast %261 : vector<1x8xf32> to vector<8x8xf32>
    %270 = vector.broadcast %268 : vector<8x1xf32> to vector<8x8xf32>
    %271 = arith.addf %269, %270 : vector<8x8xf32>
    %272 = arith.addf %271, %104 : vector<8x8xf32>
    %cst_55 = arith.constant dense<0xFF800000> : vector<8xf32>
    %273 = vector.multi_reduction <maximumf>, %272, %cst_55 [1] : vector<8x8xf32> to vector<8xf32>
    %274 = vector.shape_cast %273 : vector<8xf32> to vector<8x1xf32>
    %275 = vector.broadcast %274 : vector<8x1xf32> to vector<8x8xf32>
    %276 = arith.cmpf oeq, %272, %275 : vector<8x8xf32>
    %c8_i32_56 = arith.constant 8 : i32
    %277 = vector.broadcast %c8_i32_56 : i32 to vector<8x8xi32>
    %278 = arith.select %276, %5, %277 : vector<8x8xi1>, vector<8x8xi32>
    %cst_57 = arith.constant dense<2147483647> : vector<8xi32>
    %279 = vector.multi_reduction <minsi>, %278, %cst_57 [1] : vector<8x8xi32> to vector<8xi32>
    %280 = vector.shape_cast %279 : vector<8xi32> to vector<8x1xi32>
    %281 = vector.broadcast %274 : vector<8x1xf32> to vector<8x8xf32>
    %282 = arith.subf %272, %281 : vector<8x8xf32>
    %283 = math.exp %282 : vector<8x8xf32>
    %cst_58 = arith.constant dense<0.000000e+00> : vector<8xf32>
    %284 = vector.multi_reduction <add>, %283, %cst_58 [1] : vector<8x8xf32> to vector<8xf32>
    %285 = vector.shape_cast %284 : vector<8xf32> to vector<8x1xf32>
    %286 = math.log %285 : vector<8x1xf32>
    %287 = arith.addf %286, %274 : vector<8x1xf32>
    %288 = vector.extract_strided_slice %0 {offsets = [8, 0], sizes = [1, 8], strides = [1, 1]} : vector<10x8xf32> to vector<1x8xf32>
    %289 = vector.broadcast %287 : vector<8x1xf32> to vector<8x8xf32>
    %290 = vector.broadcast %288 : vector<1x8xf32> to vector<8x8xf32>
    %291 = arith.addf %289, %290 : vector<8x8xf32>
    %292 = arith.addf %291, %1 : vector<8x8xf32>
    %cst_59 = arith.constant dense<0xFF800000> : vector<8xf32>
    %293 = vector.multi_reduction <maximumf>, %292, %cst_59 [0] : vector<8x8xf32> to vector<8xf32>
    %294 = vector.shape_cast %293 : vector<8xf32> to vector<1x8xf32>
    %295 = vector.broadcast %294 : vector<1x8xf32> to vector<8x8xf32>
    %296 = arith.cmpf oeq, %292, %295 : vector<8x8xf32>
    %c8_i32_60 = arith.constant 8 : i32
    %297 = vector.broadcast %c8_i32_60 : i32 to vector<8x8xi32>
    %298 = arith.select %296, %4, %297 : vector<8x8xi1>, vector<8x8xi32>
    %cst_61 = arith.constant dense<2147483647> : vector<8xi32>
    %299 = vector.multi_reduction <minsi>, %298, %cst_61 [0] : vector<8x8xi32> to vector<8xi32>
    %300 = vector.shape_cast %299 : vector<8xi32> to vector<1x8xi32>
    %301 = vector.broadcast %294 : vector<1x8xf32> to vector<8x8xf32>
    %302 = arith.subf %292, %301 : vector<8x8xf32>
    %303 = math.exp %302 : vector<8x8xf32>
    %cst_62 = arith.constant dense<0.000000e+00> : vector<8xf32>
    %304 = vector.multi_reduction <add>, %303, %cst_62 [0] : vector<8x8xf32> to vector<8xf32>
    %305 = vector.shape_cast %304 : vector<8xf32> to vector<1x8xf32>
    %306 = math.log %305 : vector<1x8xf32>
    %307 = arith.addf %306, %294 : vector<1x8xf32>
    %308 = vector.extract_strided_slice %0 {offsets = [9, 0], sizes = [1, 8], strides = [1, 1]} : vector<10x8xf32> to vector<1x8xf32>
    %cst_63 = arith.constant 0.000000e+00 : f32
    %309 = vector.shape_cast %308 : vector<1x8xf32> to vector<1x8xf32>
    %310 = vector.broadcast %309 : vector<1x8xf32> to vector<8x8xf32>
    %311 = vector.broadcast %cst_63 : f32 to vector<8x8xf32>
    %312 = arith.select %7, %310, %311 : vector<8x8xi1>, vector<8x8xf32>
    %cst_64 = arith.constant dense<0.000000e+00> : vector<8xf32>
    %313 = vector.multi_reduction <add>, %312, %cst_64 [1] : vector<8x8xf32> to vector<8xf32>
    %314 = vector.shape_cast %313 : vector<8xf32> to vector<8x1xf32>
    %315 = vector.broadcast %307 : vector<1x8xf32> to vector<8x8xf32>
    %316 = vector.broadcast %314 : vector<8x1xf32> to vector<8x8xf32>
    %317 = arith.addf %315, %316 : vector<8x8xf32>
    %318 = arith.addf %317, %104 : vector<8x8xf32>
    %cst_65 = arith.constant dense<0xFF800000> : vector<8xf32>
    %319 = vector.multi_reduction <maximumf>, %318, %cst_65 [1] : vector<8x8xf32> to vector<8xf32>
    %320 = vector.shape_cast %319 : vector<8xf32> to vector<8x1xf32>
    %321 = vector.broadcast %320 : vector<8x1xf32> to vector<8x8xf32>
    %322 = arith.cmpf oeq, %318, %321 : vector<8x8xf32>
    %c8_i32_66 = arith.constant 8 : i32
    %323 = vector.broadcast %c8_i32_66 : i32 to vector<8x8xi32>
    %324 = arith.select %322, %5, %323 : vector<8x8xi1>, vector<8x8xi32>
    %cst_67 = arith.constant dense<2147483647> : vector<8xi32>
    %325 = vector.multi_reduction <minsi>, %324, %cst_67 [1] : vector<8x8xi32> to vector<8xi32>
    %326 = vector.shape_cast %325 : vector<8xi32> to vector<8x1xi32>
    %327 = vector.broadcast %320 : vector<8x1xf32> to vector<8x8xf32>
    %328 = arith.subf %318, %327 : vector<8x8xf32>
    %329 = math.exp %328 : vector<8x8xf32>
    %cst_68 = arith.constant dense<0.000000e+00> : vector<8xf32>
    %330 = vector.multi_reduction <add>, %329, %cst_68 [1] : vector<8x8xf32> to vector<8xf32>
    %331 = vector.shape_cast %330 : vector<8xf32> to vector<8x1xf32>
    %332 = math.log %331 : vector<8x1xf32>
    %333 = arith.addf %332, %320 : vector<8x1xf32>
    %334 = vector.extract_strided_slice %1 {offsets = [0, 7], sizes = [8, 1], strides = [1, 1]} : vector<8x8xf32> to vector<8x1xf32>
    %335 = arith.addf %333, %334 : vector<8x1xf32>
    %cst_69 = arith.constant dense<0xFF800000> : vector<1xf32>
    %336 = vector.multi_reduction <maximumf>, %335, %cst_69 [0] : vector<8x1xf32> to vector<1xf32>
    %337 = vector.shape_cast %336 : vector<1xf32> to vector<1x1xf32>
    %338 = vector.broadcast %337 : vector<1x1xf32> to vector<8x1xf32>
    %339 = arith.cmpf oeq, %335, %338 : vector<8x1xf32>
    %c8_i32_70 = arith.constant 8 : i32
    %340 = vector.broadcast %c8_i32_70 : i32 to vector<8x1xi32>
    %341 = arith.select %339, %3, %340 : vector<8x1xi1>, vector<8x1xi32>
    %cst_71 = arith.constant dense<2147483647> : vector<1xi32>
    %342 = vector.multi_reduction <minsi>, %341, %cst_71 [0] : vector<8x1xi32> to vector<1xi32>
    %343 = vector.shape_cast %342 : vector<1xi32> to vector<1x1xi32>
    %344 = vector.broadcast %337 : vector<1x1xf32> to vector<8x1xf32>
    %345 = arith.subf %335, %344 : vector<8x1xf32>
    %346 = math.exp %345 : vector<8x1xf32>
    %cst_72 = arith.constant dense<0.000000e+00> : vector<1xf32>
    %347 = vector.multi_reduction <add>, %346, %cst_72 [0] : vector<8x1xf32> to vector<1xf32>
    %348 = vector.shape_cast %347 : vector<1xf32> to vector<1x1xf32>
    %349 = math.log %348 : vector<1x1xf32>
    %350 = arith.addf %349, %337 : vector<1x1xf32>
    %351 = math.exp %350 : vector<1x1xf32>
    %c0_73 = arith.constant 0 : index
    %c0_74 = arith.constant 0 : index
    %352 = vector.load %arg3[%c0_73, %c0_74] : memref<1x1xf32, #tpu.memory_space<vmem>>, vector<1x1xf32>
    tpu.vector_store %arg3[%c0_73, %c0_74], %351 {strides = array<i32>} : memref<1x1xf32, #tpu.memory_space<vmem>>, vector<1x1xf32>,
    %c9_i32 = arith.constant 9 : i32
    %353 = vector.broadcast %c9_i32 : i32 to vector<1x10xi32>
    %354 = arith.cmpi eq, %6, %353 : vector<1x10xi32>
    %355 = vector.shape_cast %343 : vector<1x1xi32> to vector<1x1xi32>
    %356 = vector.broadcast %355 : vector<1x1xi32> to vector<1x10xi32>
    %c0_i32_75 = arith.constant 0 : i32
    %357 = vector.broadcast %c0_i32_75 : i32 to vector<1x10xi32>
    %358 = arith.select %354, %356, %357 : vector<1x10xi1>, vector<1x10xi32>
    %359 = vector.shape_cast %343 : vector<1x1xi32> to vector<1x1xi32>
    %360 = vector.broadcast %359 : vector<1x1xi32> to vector<8x1xi32>
    %361 = arith.cmpi eq, %3, %360 : vector<8x1xi32>
    %c-1_i32 = arith.constant -1 : i32
    %362 = vector.broadcast %c-1_i32 : i32 to vector<8x1xi32>
    %363 = arith.select %361, %326, %362 : vector<8x1xi1>, vector<8x1xi32>
    %cst_76 = arith.constant dense<-2147483648> : vector<1xi32>
    %364 = vector.multi_reduction <maxsi>, %363, %cst_76 [0] : vector<8x1xi32> to vector<1xi32>
    %365 = vector.shape_cast %364 : vector<1xi32> to vector<1x1xi32>
    %c8_i32_77 = arith.constant 8 : i32
    %366 = vector.broadcast %c8_i32_77 : i32 to vector<1x10xi32>
    %367 = arith.cmpi eq, %6, %366 : vector<1x10xi32>
    %368 = vector.shape_cast %365 : vector<1x1xi32> to vector<1x1xi32>
    %369 = vector.broadcast %368 : vector<1x1xi32> to vector<1x10xi32>
    %370 = arith.select %367, %369, %358 : vector<1x10xi1>, vector<1x10xi32>
    %371 = vector.shape_cast %365 : vector<1x1xi32> to vector<1x1xi32>
    %372 = vector.broadcast %371 : vector<1x1xi32> to vector<1x8xi32>
    %373 = arith.cmpi eq, %2, %372 : vector<1x8xi32>
    %c-1_i32_78 = arith.constant -1 : i32
    %374 = vector.broadcast %c-1_i32_78 : i32 to vector<1x8xi32>
    %375 = arith.select %373, %300, %374 : vector<1x8xi1>, vector<1x8xi32>
    %cst_79 = arith.constant dense<-2147483648> : vector<1xi32>
    %376 = vector.multi_reduction <maxsi>, %375, %cst_79 [1] : vector<1x8xi32> to vector<1xi32>
    %377 = vector.shape_cast %376 : vector<1xi32> to vector<1x1xi32>
    %c7_i32_80 = arith.constant 7 : i32
    %378 = vector.broadcast %c7_i32_80 : i32 to vector<1x10xi32>
    %379 = arith.cmpi eq, %6, %378 : vector<1x10xi32>
    %380 = vector.shape_cast %377 : vector<1x1xi32> to vector<1x1xi32>
    %381 = vector.broadcast %380 : vector<1x1xi32> to vector<1x10xi32>
    %382 = arith.select %379, %381, %370 : vector<1x10xi1>, vector<1x10xi32>
    %383 = vector.shape_cast %377 : vector<1x1xi32> to vector<1x1xi32>
    %384 = vector.broadcast %383 : vector<1x1xi32> to vector<8x1xi32>
    %385 = arith.cmpi eq, %3, %384 : vector<8x1xi32>
    %c-1_i32_81 = arith.constant -1 : i32
    %386 = vector.broadcast %c-1_i32_81 : i32 to vector<8x1xi32>
    %387 = arith.select %385, %280, %386 : vector<8x1xi1>, vector<8x1xi32>
    %cst_82 = arith.constant dense<-2147483648> : vector<1xi32>
    %388 = vector.multi_reduction <maxsi>, %387, %cst_82 [0] : vector<8x1xi32> to vector<1xi32>
    %389 = vector.shape_cast %388 : vector<1xi32> to vector<1x1xi32>
    %c6_i32_83 = arith.constant 6 : i32
    %390 = vector.broadcast %c6_i32_83 : i32 to vector<1x10xi32>
    %391 = arith.cmpi eq, %6, %390 : vector<1x10xi32>
    %392 = vector.shape_cast %389 : vector<1x1xi32> to vector<1x1xi32>
    %393 = vector.broadcast %392 : vector<1x1xi32> to vector<1x10xi32>
    %394 = arith.select %391, %393, %382 : vector<1x10xi1>, vector<1x10xi32>
    %395 = vector.shape_cast %389 : vector<1x1xi32> to vector<1x1xi32>
    %396 = vector.broadcast %395 : vector<1x1xi32> to vector<1x8xi32>
    %397 = arith.cmpi eq, %2, %396 : vector<1x8xi32>
    %c-1_i32_84 = arith.constant -1 : i32
    %398 = vector.broadcast %c-1_i32_84 : i32 to vector<1x8xi32>
    %399 = arith.select %397, %254, %398 : vector<1x8xi1>, vector<1x8xi32>
    %cst_85 = arith.constant dense<-2147483648> : vector<1xi32>
    %400 = vector.multi_reduction <maxsi>, %399, %cst_85 [1] : vector<1x8xi32> to vector<1xi32>
    %401 = vector.shape_cast %400 : vector<1xi32> to vector<1x1xi32>
    %c5_i32_86 = arith.constant 5 : i32
    %402 = vector.broadcast %c5_i32_86 : i32 to vector<1x10xi32>
    %403 = arith.cmpi eq, %6, %402 : vector<1x10xi32>
    %404 = vector.shape_cast %401 : vector<1x1xi32> to vector<1x1xi32>
    %405 = vector.broadcast %404 : vector<1x1xi32> to vector<1x10xi32>
    %406 = arith.select %403, %405, %394 : vector<1x10xi1>, vector<1x10xi32>
    %407 = vector.shape_cast %401 : vector<1x1xi32> to vector<1x1xi32>
    %408 = vector.broadcast %407 : vector<1x1xi32> to vector<8x1xi32>
    %409 = arith.cmpi eq, %3, %408 : vector<8x1xi32>
    %c-1_i32_87 = arith.constant -1 : i32
    %410 = vector.broadcast %c-1_i32_87 : i32 to vector<8x1xi32>
    %411 = arith.select %409, %234, %410 : vector<8x1xi1>, vector<8x1xi32>
    %cst_88 = arith.constant dense<-2147483648> : vector<1xi32>
    %412 = vector.multi_reduction <maxsi>, %411, %cst_88 [0] : vector<8x1xi32> to vector<1xi32>
    %413 = vector.shape_cast %412 : vector<1xi32> to vector<1x1xi32>
    %c4_i32_89 = arith.constant 4 : i32
    %414 = vector.broadcast %c4_i32_89 : i32 to vector<1x10xi32>
    %415 = arith.cmpi eq, %6, %414 : vector<1x10xi32>
    %416 = vector.shape_cast %413 : vector<1x1xi32> to vector<1x1xi32>
    %417 = vector.broadcast %416 : vector<1x1xi32> to vector<1x10xi32>
    %418 = arith.select %415, %417, %406 : vector<1x10xi1>, vector<1x10xi32>
    %419 = vector.shape_cast %413 : vector<1x1xi32> to vector<1x1xi32>
    %420 = vector.broadcast %419 : vector<1x1xi32> to vector<1x8xi32>
    %421 = arith.cmpi eq, %2, %420 : vector<1x8xi32>
    %c-1_i32_90 = arith.constant -1 : i32
    %422 = vector.broadcast %c-1_i32_90 : i32 to vector<1x8xi32>
    %423 = arith.select %421, %208, %422 : vector<1x8xi1>, vector<1x8xi32>
    %cst_91 = arith.constant dense<-2147483648> : vector<1xi32>
    %424 = vector.multi_reduction <maxsi>, %423, %cst_91 [1] : vector<1x8xi32> to vector<1xi32>
    %425 = vector.shape_cast %424 : vector<1xi32> to vector<1x1xi32>
    %c3_i32_92 = arith.constant 3 : i32
    %426 = vector.broadcast %c3_i32_92 : i32 to vector<1x10xi32>
    %427 = arith.cmpi eq, %6, %426 : vector<1x10xi32>
    %428 = vector.shape_cast %425 : vector<1x1xi32> to vector<1x1xi32>
    %429 = vector.broadcast %428 : vector<1x1xi32> to vector<1x10xi32>
    %430 = arith.select %427, %429, %418 : vector<1x10xi1>, vector<1x10xi32>
    %431 = vector.shape_cast %425 : vector<1x1xi32> to vector<1x1xi32>
    %432 = vector.broadcast %431 : vector<1x1xi32> to vector<8x1xi32>
    %433 = arith.cmpi eq, %3, %432 : vector<8x1xi32>
    %c-1_i32_93 = arith.constant -1 : i32
    %434 = vector.broadcast %c-1_i32_93 : i32 to vector<8x1xi32>
    %435 = arith.select %433, %188, %434 : vector<8x1xi1>, vector<8x1xi32>
    %cst_94 = arith.constant dense<-2147483648> : vector<1xi32>
    %436 = vector.multi_reduction <maxsi>, %435, %cst_94 [0] : vector<8x1xi32> to vector<1xi32>
    %437 = vector.shape_cast %436 : vector<1xi32> to vector<1x1xi32>
    %c2_i32_95 = arith.constant 2 : i32
    %438 = vector.broadcast %c2_i32_95 : i32 to vector<1x10xi32>
    %439 = arith.cmpi eq, %6, %438 : vector<1x10xi32>
    %440 = vector.shape_cast %437 : vector<1x1xi32> to vector<1x1xi32>
    %441 = vector.broadcast %440 : vector<1x1xi32> to vector<1x10xi32>
    %442 = arith.select %439, %441, %430 : vector<1x10xi1>, vector<1x10xi32>
    %443 = vector.shape_cast %437 : vector<1x1xi32> to vector<1x1xi32>
    %444 = vector.broadcast %443 : vector<1x1xi32> to vector<1x8xi32>
    %445 = arith.cmpi eq, %2, %444 : vector<1x8xi32>
    %c-1_i32_96 = arith.constant -1 : i32
    %446 = vector.broadcast %c-1_i32_96 : i32 to vector<1x8xi32>
    %447 = arith.select %445, %162, %446 : vector<1x8xi1>, vector<1x8xi32>
    %cst_97 = arith.constant dense<-2147483648> : vector<1xi32>
    %448 = vector.multi_reduction <maxsi>, %447, %cst_97 [1] : vector<1x8xi32> to vector<1xi32>
    %449 = vector.shape_cast %448 : vector<1xi32> to vector<1x1xi32>
    %c1_i32_98 = arith.constant 1 : i32
    %450 = vector.broadcast %c1_i32_98 : i32 to vector<1x10xi32>
    %451 = arith.cmpi eq, %6, %450 : vector<1x10xi32>
    %452 = vector.shape_cast %449 : vector<1x1xi32> to vector<1x1xi32>
    %453 = vector.broadcast %452 : vector<1x1xi32> to vector<1x10xi32>
    %454 = arith.select %451, %453, %442 : vector<1x10xi1>, vector<1x10xi32>
    %455 = vector.shape_cast %449 : vector<1x1xi32> to vector<1x1xi32>
    %456 = vector.broadcast %455 : vector<1x1xi32> to vector<8x1xi32>
    %457 = arith.cmpi eq, %3, %456 : vector<8x1xi32>
    %c-1_i32_99 = arith.constant -1 : i32
    %458 = vector.broadcast %c-1_i32_99 : i32 to vector<8x1xi32>
    %459 = arith.select %457, %142, %458 : vector<8x1xi1>, vector<8x1xi32>
    %cst_100 = arith.constant dense<-2147483648> : vector<1xi32>
    %460 = vector.multi_reduction <maxsi>, %459, %cst_100 [0] : vector<8x1xi32> to vector<1xi32>
    %461 = vector.shape_cast %460 : vector<1xi32> to vector<1x1xi32>
    %c0_i32_101 = arith.constant 0 : i32
    %462 = vector.broadcast %c0_i32_101 : i32 to vector<1x10xi32>
    %463 = arith.cmpi eq, %6, %462 : vector<1x10xi32>
    %464 = vector.shape_cast %461 : vector<1x1xi32> to vector<1x1xi32>
    %465 = vector.broadcast %464 : vector<1x1xi32> to vector<1x10xi32>
    %466 = arith.select %463, %465, %454 : vector<1x10xi1>, vector<1x10xi32>
    %c0_102 = arith.constant 0 : index
    %c0_103 = arith.constant 0 : index
    %467 = vector.load %arg2[%c0_102, %c0_103] : memref<1x10xi32, #tpu.memory_space<vmem>>, vector<1x10xi32>
    tpu.vector_store %arg2[%c0_102, %c0_103], %466 {strides = array<i32>} : memref<1x10xi32, #tpu.memory_space<vmem>>, vector<1x10xi32>,
    return
  }
}

</mosaic_0001>

<bundles_post_ra>
// kernel: crf_forward.1
= control target key start
LH: loop header
LB: loop body
LE: loop exit
PB: predicated region body
PF: predicated region fallthrough
CT: control target
= control target key end

     0   :  { %9 = vsyncpa [#allocation3], 0  ;;  %v18_v1 = vlaneseq  ;;  %s1095_s0 = inlined_call_operand.vmem [shape: f32[10,8], index: 0, kind: input, shape index: {}]   ;;  %s1096_s1 = inlined_call_operand.vmem [shape: f32[8,8], index: 1, kind: input, shape index: {}]   ;;  %s1097_s2 = inlined_call_operand.hbm [shape: s32[1,10], index: 2, kind: output, shape index: {0}]   ;;  %s1098_s3 = inlined_call_operand.hbm [shape: f32[1,1], index: 3, kind: output, shape index: {1}]  }
   0x1   :  { %v776_v0 = vld [vmem:[%s1096_s1] sm:$0xff] }
   0x2   :  { %10 = vsyncpa [#allocation5], 0  ;;  %v39_v2 = vperm.slane %v776_v0, 2  ;;  %v24_v3 = vperm.slane %v776_v0, 0  ;;  %v53_v4 = vperm.slane %v776_v0, 4  ;;  %v781_v5 = vand.u32 127, %v18_v1 }
   0x3   :  { %v783_v6 = vshrl.u32 %v18_v1, 7  ;;  %vm26_vm0 = vcmask 64512   ;;  %v46_v8 = vperm.slane %v776_v0, 3  ;;  %v32_v12 = vperm.slane %v776_v0, 1  ;;  %v812_v20 = vld [vmem:[%s1095_s0] sm:$0xff]  ;;  %s751_s17 = smov [#allocation4]  }
   0x4   :  { %v60_v16 = vperm.slane %v776_v0, 5  ;;  %v67_v24 = vperm.slane %v776_v0, 6  ;;  %v105_v25 = vperm.slane %v812_v20, 1  ;;  %v74_v26 = vperm.slane %v776_v0, 7  ;;  %s627_s18 = sshll.u32 %s751_s17, 4  ;;  %s629_s21 = sshll.u32 %s1098_s3, 4  ;;  %s628_s18 = int_to_ptr.vmem [resolvable:$true] %s627_s18  ;;  %s630_s21 = int_to_ptr.hbm [resolvable:$true] %s629_s21 }
   0x5   :  { %vm787_vm1 = vcmp.eq.s32.totalorder %v783_v6, %v781_v5  ;;  %vm80_vm2 = vcmp.eq.s32.totalorder %v783_v6, 7  ;;  %v82_v33 = vperm.slane %v812_v20, 0  ;;  %v748_v34 = vmov -10000.0   ;;  %s752_s3 = smov [#allocation2]   ;;  %s618_s25 = sshll.u32 %s1097_s2, 4  ;;  %s619_s25 = int_to_ptr.hbm [resolvable:$true] %s618_s25 }
   0x6   :  { %v40_v9 = vsel %vm787_vm1, %v39_v2, 0.0  ;;  %v25_v10 = vsel %vm787_vm1, %v24_v3, 0.0  ;;  %v54_v11 = vsel %vm787_vm1, %v53_v4, 0.0  ;;  %v47_v17 = vsel %vm787_vm1, %v46_v8, 0.0  ;;  %s616_s22 = sshll.u32 %s752_s3, 4  ;;  %s617_s22 = int_to_ptr.vmem [resolvable:$true] %s616_s22 }
   0x7   :  { %v41_v13 = vsel %vm26_vm0, %v40_v9, 0.0  ;;  %v27_v14 = vsel %vm26_vm0, %v25_v10, 0.0  ;;  %v55_v15 = vsel %vm26_vm0, %v54_v11, 0.0  ;;  %v33_v18 = vsel %vm787_vm1, %v32_v12, 0.0 }
   0x8   :  { %42 = vadd.xlane.f32.xlu1 %v41_v13  ;;  %28 = vadd.xlane.f32.xlu0 %v27_v14  ;;  %v61_v19 = vsel %vm787_vm1, %v60_v16, 0.0  ;;  %v48_v21 = vsel %vm26_vm0, %v47_v17, 0.0  ;;  %v34_v22 = vsel %vm26_vm0, %v33_v18, 0.0  ;;  %v68_v27 = vsel %vm787_vm1, %v67_v24, 0.0 }
   0x9   :  { %56 = vadd.xlane.f32.xlu2 %v55_v15  ;;  %v62_v23 = vsel %vm26_vm0, %v61_v19, 0.0  ;;  %v106_v28 = vsel %vm787_vm1, %v105_v25, 0.0  ;;  %v75_v29 = vsel %vm787_vm1, %v74_v26, 0.0  ;;  %v69_v30 = vsel %vm26_vm0, %v68_v27, 0.0 }
   0xa   :  { %v107_v31 = vsel %vm26_vm0, %v106_v28, 0.0  ;;  %v76_v32 = vsel %vm26_vm0, %v75_v29, 0.0  ;;  %v81_v35 = vsel %vm80_vm2, 0.0, %v748_v34  ;;  %vm1099_vm3 = vcmp.eq.s32.totalorder %v781_v5, 0 }
   0xb   :  { %v83_v36 = vadd.f32 %v82_v33, %v81_v35  ;;  %vm1100_vm4 = vcmp.eq.s32.totalorder %v781_v5, 1  ;;  %vm1101_vm5 = vcmp.eq.s32.totalorder %v781_v5, 2  ;;  %vm45_vm6 = vcmp.eq.s32.totalorder %v781_v5, 3 }
   0xc   :  { %vm52_vm7 = vcmp.eq.s32.totalorder %v781_v5, 4  ;;  %vm59_vm8 = vcmp.eq.s32.totalorder %v781_v5, 5  ;;  %vm66_vm9 = vcmp.eq.s32.totalorder %v781_v5, 6  ;;  %vm73_vm10 = vcmp.eq.s32.totalorder %v781_v5, 7 }
   0xd   :  { %v84_v37 = vadd.f32 %v83_v36, %v776_v0  ;;  %v176_v18 = vperm.slane %v812_v20, 3  ;;  %v141_v29 = vperm.slane %v812_v20, 2 }
   0xf   :  { %v85_v38 = vsel %vm26_vm0, %v84_v37, -inf  ;;  %v177_v19 = vsel %vm787_vm1, %v176_v18, 0.0 }
  0x10   :  { %49 = vadd.xlane.f32.xlu1 %v48_v21  ;;  %35 = vadd.xlane.f32.xlu0 %v34_v22  ;;  %v86_v39 = vrot.slane %v85_v38, 4  ;;  %v178_v21 = vsel %vm26_vm0, %v177_v19, 0.0 }
  0x11   :  { %63 = vadd.xlane.f32.xlu2 %v62_v23 }
  0x12   :  { %v87_v40 = vmax.f32 %v85_v38, %v86_v39 }
  0x14   :  { %v88_v41 = vrot.slane %v87_v40, 2 }
  0x16   :  { %v89_v42 = vmax.f32 %v87_v40, %v88_v41 }
  0x18   :  { %70 = vadd.xlane.f32.xlu0 %v69_v30  ;;  %108 = vadd.xlane.f32.xlu1 %v107_v31  ;;  %v90_v43 = vrot.slane %v89_v42, 1 }
  0x19   :  { %77 = vadd.xlane.f32.xlu2 %v76_v32 }
  0x1a   :  { %v91_v44 = vmax.f32 %v89_v42, %v90_v43 }
  0x1c   :  { %v92_v45 = vsub.f32 %v84_v37, %v91_v44 }
  0x1e   :  { %v93_v46 = vmul.f32 1.442695, %v92_v45 }
  0x20   :  { %650 = vpow2.f32 %v93_v46 }
  0x21   :  { %179 = vadd.xlane.f32.xlu2 %v178_v21 }
  0x26   :  { %v651_v47 = vpop.eup %650 }
  0x27   :  { %v95_v48 = vsel %vm26_vm0, %v651_v47, 0.0 }
  0x28   :  { %v96_v49 = vrot.slane %v95_v48, 4 }
  0x2a   :  { %v97_v50 = vadd.f32 %v96_v49, %v95_v48 }
  0x2c   :  { %v98_v51 = vrot.slane %v97_v50, 2 }
  0x2e   :  { %v99_v52 = vadd.f32 %v98_v51, %v97_v50 }
  0x30   :  { %v100_v53 = vrot.slane %v99_v52, 1 }
  0x32   :  { %v101_v54 = vadd.f32 %v100_v53, %v99_v52 }
  0x34   :  { %652 = vlog2.f32 %v101_v54 }
  0x3a   :  { %v653_v58 = vpop.eup %652 }
  0x3b   :  { %v103_v1 = vmul.f32 0.6931472, %v653_v58  ;;  %v247_v58 = vperm.slane %v812_v20, 5 }
  0x3d   :  { %v104_v8 = vadd.f32 %v103_v1, %v91_v44 }
  0x7b   :  { %v43_v55 = vpop.xlane.xlu1 %42  ;;  %v29_v56 = vpop.xlane.xlu0 %28 }
  0x7c   :  { %v57_v57 = vpop.xlane.xlu2 %56  ;;  %v30_v59 = vsel %vm1099_vm3, %v29_v56, 0.0 }
  0x83   :  { %v50_v60 = vpop.xlane.xlu1 %49  ;;  %v36_v61 = vpop.xlane.xlu0 %35 }
  0x84   :  { %v37_v62 = vsel %vm1100_vm4, %v36_v61, %v30_v59  ;;  %v64_v63 = vpop.xlane.xlu2 %63  ;;  %v248_v59 = vsel %vm787_vm1, %v247_v58, 0.0 }
  0x85   :  { %v44_v2 = vsel %vm1101_vm5, %v43_v55, %v37_v62 }
  0x86   :  { %v51_v3 = vsel %vm45_vm6, %v50_v60, %v44_v2  ;;  %v249_v60 = vsel %vm26_vm0, %v248_v59, 0.0 }
  0x87   :  { %v58_v4 = vsel %vm52_vm7, %v57_v57, %v51_v3  ;;  %250 = vadd.xlane.f32.xlu2 %v249_v60 }
  0x88   :  { %v65_v9 = vsel %vm59_vm8, %v64_v63, %v58_v4 }
  0x8b   :  { %v71_v10 = vpop.xlane.xlu0 %70  ;;  %v109_v11 = vpop.xlane.xlu1 %108 }
  0x8c   :  { %v72_v12 = vsel %vm66_vm9, %v71_v10, %v65_v9  ;;  %v110_v13 = vadd.f32 %v109_v11, %v104_v8  ;;  %v78_v14 = vpop.xlane.xlu2 %77  ;;  %v212_v8 = vperm.slane %v812_v20, 4 }
  0x8d   :  { %v858_v15 = vsel %vm73_vm10, %v78_v14, %v72_v12 }
  0x8e   :  { %v861_v16 = vadd.f32 %v110_v13, %v858_v15 }
  0x90   :  { %v112_v17 = vsel %vm26_vm0, %v861_v16, -inf }
  0x91   :  { %113 = vmax.xlane.f32.xlu0 %v112_v17 }
  0x94   :  { %v180_v53 = vpop.xlane.xlu2 %179 }
 0x104   :  { %v869_v22 = vpop.xlane.xlu0 %113 }
 0x105   :  { %v132_v23 = vsub.f32 %v861_v16, %v869_v22 }
 0x107   :  { %v133_v24 = vmul.f32 1.442695, %v132_v23 }
 0x109   :  { %654 = vpow2.f32 %v133_v24 }
 0x10f   :  { %v655_v25 = vpop.eup %654 }
 0x110   :  { %v135_v26 = vsel %vm26_vm0, %v655_v25, 0.0 }
 0x111   :  { %136 = vadd.xlane.f32.xlu1 %v135_v26 }
 0x184   :  { %v137_v27 = vpop.xlane.xlu1 %136 }
 0x185   :  { %656 = vlog2.f32 %v137_v27 }
 0x18b   :  { %v657_v28 = vpop.eup %656 }
 0x18c   :  { %v139_v30 = vmul.f32 0.6931472, %v657_v28 }
 0x18e   :  { %v140_v31 = vadd.f32 %v139_v30, %v869_v22 }
 0x190   :  { %v142_v32 = vadd.f32 %v141_v29, %v140_v31 }
 0x192   :  { %v877_v33 = vadd.f32 %v142_v32, %v776_v0 }
 0x194   :  { %v144_v34 = vsel %vm26_vm0, %v877_v33, -inf }
 0x195   :  { %v145_v35 = vrot.slane %v144_v34, 4 }
 0x197   :  { %v146_v36 = vmax.f32 %v144_v34, %v145_v35 }
 0x199   :  { %v147_v37 = vrot.slane %v146_v36, 2 }
 0x19b   :  { %v148_v38 = vmax.f32 %v146_v36, %v147_v37  ;;  %v251_v37 = vpop.xlane.xlu2 %250 }
 0x19d   :  { %v149_v39 = vrot.slane %v148_v38, 1 }
 0x19f   :  { %v881_v40 = vmax.f32 %v148_v38, %v149_v39 }
 0x1a1   :  { %vm151_vm11 = vcmp.eq.f32.partialorder %v877_v33, %v881_v40  ;;  %v163_v41 = vsub.f32 %v877_v33, %v881_v40 }
 0x1a3   :  { %v164_v42 = vmul.f32 1.442695, %v163_v41 }
 0x1a5   :  { %658 = vpow2.f32 %v164_v42 }
 0x1ab   :  { %v659_v43 = vpop.eup %658 }
 0x1ac   :  { %v166_v44 = vsel %vm26_vm0, %v659_v43, 0.0  ;;  %v318_v43 = vperm.slane %v812_v20, 7 }
 0x1ad   :  { %v167_v45 = vrot.slane %v166_v44, 4 }
 0x1af   :  { %v168_v46 = vadd.f32 %v167_v45, %v166_v44  ;;  %v319_v44 = vsel %vm787_vm1, %v318_v43, 0.0 }
 0x1b0   :  { %v320_v45 = vsel %vm26_vm0, %v319_v44, 0.0 }
 0x1b1   :  { %v169_v47 = vrot.slane %v168_v46, 2  ;;  %321 = vadd.xlane.f32.xlu2 %v320_v45 }
 0x1b3   :  { %v170_v48 = vadd.f32 %v169_v47, %v168_v46 }
 0x1b5   :  { %v171_v49 = vrot.slane %v170_v48, 1 }
 0x1b7   :  { %v172_v50 = vadd.f32 %v171_v49, %v170_v48 }
 0x1b9   :  { %660 = vlog2.f32 %v172_v50 }
 0x1bf   :  { %v661_v51 = vpop.eup %660 }
 0x1c0   :  { %v174_v52 = vmul.f32 0.6931472, %v661_v51 }
 0x1c2   :  { %v175_v54 = vadd.f32 %v174_v52, %v881_v40 }
 0x1c4   :  { %v181_v55 = vadd.f32 %v180_v53, %v175_v54  ;;  %v283_v53 = vperm.slane %v812_v20, 6 }
 0x1c6   :  { %v890_v56 = vadd.f32 %v181_v55, %v858_v15 }
 0x1c8   :  { %v183_v57 = vsel %vm26_vm0, %v890_v56, -inf }
 0x1c9   :  { %184 = vmax.xlane.f32.xlu0 %v183_v57 }
 0x23c   :  { %v898_v61 = vpop.xlane.xlu0 %184 }
 0x23d   :  { %v203_v62 = vsub.f32 %v890_v56, %v898_v61 }
 0x23f   :  { %v204_v63 = vmul.f32 1.442695, %v203_v62 }
 0x241   :  { %662 = vpow2.f32 %v204_v63 }
 0x247   :  { %v663_v1 = vpop.eup %662 }
 0x248   :  { %v206_v2 = vsel %vm26_vm0, %v663_v1, 0.0 }
 0x249   :  { %207 = vadd.xlane.f32.xlu1 %v206_v2 }
 0x2bc   :  { %v208_v3 = vpop.xlane.xlu1 %207 }
 0x2bd   :  { %664 = vlog2.f32 %v208_v3 }
 0x2c3   :  { %v665_v4 = vpop.eup %664 }
 0x2c4   :  { %v210_v9 = vmul.f32 0.6931472, %v665_v4 }
 0x2c6   :  { %v211_v10 = vadd.f32 %v210_v9, %v898_v61 }
 0x2c8   :  { %v213_v11 = vadd.f32 %v212_v8, %v211_v10 }
 0x2ca   :  { %v906_v12 = vadd.f32 %v213_v11, %v776_v0 }
 0x2cc   :  { %v215_v13 = vsel %vm26_vm0, %v906_v12, -inf }
 0x2cd   :  { %v216_v14 = vrot.slane %v215_v13, 4 }
 0x2cf   :  { %v217_v17 = vmax.f32 %v215_v13, %v216_v14 }
 0x2d1   :  { %v218_v18 = vrot.slane %v217_v17, 2 }
 0x2d3   :  { %v219_v19 = vmax.f32 %v217_v17, %v218_v18 }
 0x2d5   :  { %v220_v21 = vrot.slane %v219_v19, 1 }
 0x2d7   :  { %v910_v23 = vmax.f32 %v219_v19, %v220_v21 }
 0x2d9   :  { %vm222_vm12 = vcmp.eq.f32.partialorder %v906_v12, %v910_v23  ;;  %v234_v24 = vsub.f32 %v906_v12, %v910_v23 }
 0x2db   :  { %v235_v25 = vmul.f32 1.442695, %v234_v24  ;;  %v322_v24 = vpop.xlane.xlu2 %321 }
 0x2dd   :  { %666 = vpow2.f32 %v235_v25 }
 0x2e3   :  { %v667_v26 = vpop.eup %666 }
 0x2e4   :  { %v237_v27 = vsel %vm26_vm0, %v667_v26, 0.0 }
 0x2e5   :  { %v238_v28 = vrot.slane %v237_v27, 4 }
 0x2e7   :  { %v239_v29 = vadd.f32 %v238_v28, %v237_v27 }
 0x2e9   :  { %v240_v30 = vrot.slane %v239_v29, 2 }
 0x2eb   :  { %v241_v31 = vadd.f32 %v240_v30, %v239_v29  ;;  %v16_v29 = vld [vmem:[%s1095_s0 + $0x8] sm:$0x3]  ;;  %s750_s0 = smov 121  }
 0x2ec   :  { %v389_v30 = vperm.slane %v16_v29, 1  ;;  %v354_v43 = vperm.slane %v16_v29, 0 }
 0x2ed   :  { %v242_v32 = vrot.slane %v241_v31, 1 }
 0x2ef   :  { %v243_v34 = vadd.f32 %v242_v32, %v241_v31  ;;  %v390_v31 = vsel %vm787_vm1, %v389_v30, 0.0 }
 0x2f0   :  { %v391_v32 = vsel %vm26_vm0, %v390_v31, 0.0 }
 0x2f1   :  { %668 = vlog2.f32 %v243_v34  ;;  %392 = vadd.xlane.f32.xlu2 %v391_v32 }
 0x2f7   :  { %v669_v35 = vpop.eup %668 }
 0x2f8   :  { %v245_v36 = vmul.f32 0.6931472, %v669_v35 }
 0x2fa   :  { %v246_v38 = vadd.f32 %v245_v36, %v910_v23 }
 0x2fc   :  { %v252_v39 = vadd.f32 %v251_v37, %v246_v38 }
 0x2fe   :  { %v919_v41 = vadd.f32 %v252_v39, %v858_v15 }
 0x300   :  { %v254_v42 = vsel %vm26_vm0, %v919_v41, -inf }
 0x301   :  { %255 = vmax.xlane.f32.xlu0 %v254_v42 }
 0x374   :  { %v927_v46 = vpop.xlane.xlu0 %255 }
 0x375   :  { %v274_v47 = vsub.f32 %v919_v41, %v927_v46 }
 0x377   :  { %v275_v48 = vmul.f32 1.442695, %v274_v47 }
 0x379   :  { %670 = vpow2.f32 %v275_v48 }
 0x37f   :  { %v671_v49 = vpop.eup %670 }
 0x380   :  { %v277_v50 = vsel %vm26_vm0, %v671_v49, 0.0 }
 0x381   :  { %278 = vadd.xlane.f32.xlu1 %v277_v50 }
 0x3f4   :  { %v279_v51 = vpop.xlane.xlu1 %278 }
 0x3f5   :  { %672 = vlog2.f32 %v279_v51 }
 0x3fb   :  { %v673_v52 = vpop.eup %672 }
 0x3fc   :  { %v281_v54 = vmul.f32 0.6931472, %v673_v52 }
 0x3fe   :  { %v282_v55 = vadd.f32 %v281_v54, %v927_v46 }
 0x400   :  { %v284_v57 = vadd.f32 %v283_v53, %v282_v55 }
 0x402   :  { %v935_v58 = vadd.f32 %v284_v57, %v776_v0 }
 0x404   :  { %v286_v59 = vsel %vm26_vm0, %v935_v58, -inf }
 0x405   :  { %v287_v60 = vrot.slane %v286_v59, 4 }
 0x407   :  { %v288_v62 = vmax.f32 %v286_v59, %v287_v60 }
 0x409   :  { %v289_v63 = vrot.slane %v288_v62, 2 }
 0x40b   :  { %v290_v1 = vmax.f32 %v288_v62, %v289_v63 }
 0x40d   :  { %v291_v2 = vrot.slane %v290_v1, 1 }
 0x40f   :  { %v939_v3 = vmax.f32 %v290_v1, %v291_v2 }
 0x411   :  { %vm293_vm13 = vcmp.eq.f32.partialorder %v935_v58, %v939_v3  ;;  %v305_v20 = vsub.f32 %v935_v58, %v939_v3 }
 0x413   :  { %v306_v4 = vmul.f32 1.442695, %v305_v20 }
 0x415   :  { %674 = vpow2.f32 %v306_v4 }
 0x41b   :  { %v675_v8 = vpop.eup %674 }
 0x41c   :  { %v308_v9 = vsel %vm26_vm0, %v675_v8, 0.0 }
 0x41d   :  { %v309_v10 = vrot.slane %v308_v9, 4 }
 0x41f   :  { %v310_v11 = vadd.f32 %v309_v10, %v308_v9  ;;  %v393_v10 = vpop.xlane.xlu2 %392 }
 0x421   :  { %v311_v13 = vrot.slane %v310_v11, 2 }
 0x423   :  { %v312_v14 = vadd.f32 %v311_v13, %v310_v11 }
 0x425   :  { %v313_v17 = vrot.slane %v312_v14, 1 }
 0x427   :  { %v314_v18 = vadd.f32 %v313_v17, %v312_v14 }
 0x429   :  { %676 = vlog2.f32 %v314_v18 }
 0x42f   :  { %v677_v19 = vpop.eup %676 }
 0x430   :  { %v316_v21 = vmul.f32 0.6931472, %v677_v19 }
 0x432   :  { %v317_v25 = vadd.f32 %v316_v21, %v939_v3 }
 0x434   :  { %v323_v26 = vadd.f32 %v322_v24, %v317_v25 }
 0x436   :  { %v948_v27 = vadd.f32 %v323_v26, %v858_v15 }
 0x438   :  { %v325_v28 = vsel %vm26_vm0, %v948_v27, -inf }
 0x439   :  { %326 = vmax.xlane.f32.xlu0 %v325_v28 }
 0x4ac   :  { %v327_v34 = vpop.xlane.xlu0 %326 }
 0x4ad   :  { %v345_v35 = vsub.f32 %v948_v27, %v327_v34  ;;  %vm328_vm1 = vcmp.eq.f32.partialorder %v948_v27, %v327_v34 }
 0x4ae   :  { %v329_v31 = vsel %vm328_vm1, %v781_v5, 8 }
 0x4af   :  { %v346_v36 = vmul.f32 1.442695, %v345_v35 }
 0x4b1   :  { %678 = vpow2.f32 %v346_v36 }
 0x4b7   :  { %v679_v37 = vpop.eup %678 }
 0x4b8   :  { %v348_v38 = vsel %vm26_vm0, %v679_v37, 0.0  ;;  %v330_v37 = vsel %vm26_vm0, %v329_v31, 2147483647 }
 0x4b9   :  { %349 = vadd.xlane.f32.xlu1 %v348_v38 }
 0x52c   :  { %v350_v39 = vpop.xlane.xlu1 %349 }
 0x52d   :  { %680 = vlog2.f32 %v350_v39  ;;  %v332_v39 = vshra.s32 %v330_v37, 16 }
 0x533   :  { %v681_v42 = vpop.eup %680 }
 0x534   :  { %v352_v44 = vmul.f32 0.6931472, %v681_v42  ;;  %v334_v42 = vcvt.s32.f32 %v332_v39 }
 0x536   :  { %v353_v45 = vadd.f32 %v352_v44, %v327_v34 }
 0x538   :  { %v355_v7 = vadd.f32 %v354_v43, %v353_v45 }
 0x53a   :  { %v961_v47 = vadd.f32 %v355_v7, %v776_v0 }
 0x53c   :  { %v357_v48 = vsel %vm26_vm0, %v961_v47, -inf }
 0x53d   :  { %v358_v49 = vrot.slane %v357_v48, 4 }
 0x53f   :  { %v359_v50 = vmax.f32 %v357_v48, %v358_v49 }
 0x541   :  { %v360_v51 = vrot.slane %v359_v50, 2 }
 0x543   :  { %v361_v52 = vmax.f32 %v359_v50, %v360_v51 }
 0x545   :  { %v362_v53 = vrot.slane %v361_v52, 1 }
 0x547   :  { %v965_v54 = vmax.f32 %v361_v52, %v362_v53 }
 0x549   :  { %vm364_vm14 = vcmp.eq.f32.partialorder %v961_v47, %v965_v54  ;;  %v376_v55 = vsub.f32 %v961_v47, %v965_v54 }
 0x54b   :  { %v377_v57 = vmul.f32 1.442695, %v376_v55 }
 0x54d   :  { %682 = vpow2.f32 %v377_v57 }
 0x553   :  { %v683_v59 = vpop.eup %682 }
 0x554   :  { %v379_v60 = vsel %vm26_vm0, %v683_v59, 0.0 }
 0x555   :  { %v380_v62 = vrot.slane %v379_v60, 4 }
 0x557   :  { %v381_v63 = vadd.f32 %v380_v62, %v379_v60 }
 0x559   :  { %v382_v1 = vrot.slane %v381_v63, 2 }
 0x55b   :  { %v383_v2 = vadd.f32 %v382_v1, %v381_v63 }
 0x55d   :  { %v384_v20 = vrot.slane %v383_v2, 1 }
 0x55f   :  { %v385_v4 = vadd.f32 %v384_v20, %v383_v2 }
 0x561   :  { %684 = vlog2.f32 %v385_v4 }
 0x567   :  { %v685_v8 = vpop.eup %684 }
 0x568   :  { %v387_v9 = vmul.f32 0.6931472, %v685_v8 }
 0x56a   :  { %v388_v11 = vadd.f32 %v387_v9, %v965_v54 }
 0x56c   :  { %v394_v13 = vadd.f32 %v393_v10, %v388_v11 }
 0x56e   :  { %v395_v14 = vadd.f32 %v394_v13, %v858_v15  ;;  %v749_v13 = vmov 7  }
 0x56f   :  { %648 = vset.pattern.permute.xlu1 %v749_v13  ;;  %649 = vset.pattern.permute.xlu0 %v749_v13 }
 0x570   :  { %v396_v17 = vsel %vm26_vm0, %v395_v14, -inf }
 0x571   :  { %397 = vmax.xlane.f32.xlu0 %v396_v17 }
 0x5e4   :  { %v398_v18 = vpop.xlane.xlu0 %397 }
 0x5e5   :  { %vm399_vm15 = vcmp.eq.f32.partialorder %v395_v14, %v398_v18  ;;  %v416_v19 = vsub.f32 %v395_v14, %v398_v18 }
 0x5e6   :  { %v400_v21 = vsel %vm399_vm15, %v781_v5, 8  ;;  %vm426_vm15 = vcmask 64568  }
 0x5e7   :  { %v417_v24 = vmul.f32 1.442695, %v416_v19  ;;  %v401_v25 = vsel %vm26_vm0, %v400_v21, 2147483647 }
 0x5e8   :  { %v403_v26 = vshra.s32 %v401_v25, 16  ;;  %v402_v15 = vand.u32 65535, %v401_v25 }
 0x5e9   :  { %686 = vpow2.f32 %v417_v24 }
 0x5ea   :  { %v405_v28 = vcvt.s32.f32 %v403_v26  ;;  %v404_v35 = vcvt.s32.f32 %v402_v15 }
 0x5ec   :  { %406 = vmin.xlane.f32.xlu1 %v405_v28 }
 0x5ef   :  { %v687_v29 = vpop.eup %686 }
 0x5f0   :  { %v419_v30 = vsel %vm26_vm0, %v687_v29, 0.0 }
 0x5f1   :  { %420 = vadd.xlane.f32.xlu2 %v419_v30  ;;  %v331_v30 = vand.u32 65535, %v330_v37 }
 0x65f   :  { %v407_v32 = vpop.xlane.xlu1 %406 }
 0x660   :  { %vm408_vm2 = vcmp.eq.f32.partialorder %v405_v28, %v407_v32  ;;  %v413_v21 = vcvt.f32.s32 %v407_v32 }
 0x661   :  { %v409_v36 = vsel %vm408_vm2, %v404_v35, inf }
 0x662   :  { %410 = vmin.xlane.f32.xlu0 %v409_v36  ;;  %v414_v25 = vshll.u32 %v413_v21, 16 }
 0x664   :  { %v421_v38 = vpop.xlane.xlu2 %420 }
 0x665   :  { %688 = vlog2.f32 %v421_v38  ;;  %v333_v38 = vcvt.s32.f32 %v331_v30 }
 0x66a   :  { %335 = vmin.xlane.f32.xlu0 %v334_v42 }
 0x66b   :  { %v689_v43 = vpop.eup %688 }
 0x66c   :  { %v423_v44 = vmul.f32 0.6931472, %v689_v43 }
 0x66e   :  { %v424_v45 = vadd.f32 %v423_v44, %v398_v18 }
 0x670   :  { %v425_v27 = vadd.f32 %v424_v45, %v776_v0 }
 0x672   :  { %v427_v34 = vsel %vm426_vm15, %v425_v27, -inf }
 0x673   :  { %v428_v7 = vrot.slane %v427_v34, 4 }
 0x675   :  { %v429_v48 = vmax.f32 %v427_v34, %v428_v7 }
 0x677   :  { %v430_v49 = vrot.slane %v429_v48, 2 }
 0x679   :  { %v431_v50 = vmax.f32 %v429_v48, %v430_v49 }
 0x67b   :  { %v432_v51 = vrot.slane %v431_v50, 1 }
 0x67d   :  { %v433_v52 = vmax.f32 %v431_v50, %v432_v51 }
 0x67f   :  { %v446_v53 = vsub.f32 %v425_v27, %v433_v52  ;;  %vm434_vm1 = vcmp.eq.f32.partialorder %v425_v27, %v433_v52 }
 0x680   :  { %v435_v9 = vsel %vm434_vm1, %v783_v6, 8  ;;  %vm257_vm1 = vcmp.eq.f32.partialorder %v919_v41, %v927_v46 }
 0x681   :  { %v447_v55 = vmul.f32 1.442695, %v446_v53  ;;  %v436_v10 = vsel %vm426_vm15, %v435_v9, 2147483647  ;;  %v258_v32 = vsel %vm257_vm1, %v781_v5, 8 }
 0x682   :  { %v437_v11 = vrot.slane %v436_v10, 4  ;;  %v259_v44 = vsel %vm26_vm0, %v258_v32, 2147483647 }
 0x683   :  { %690 = vpow2.f32 %v447_v55  ;;  %v261_v46 = vshra.s32 %v259_v44, 16  ;;  %v260_v55 = vand.u32 65535, %v259_v44 }
 0x684   :  { %vm438_vm2 = vcmp.lt.s32.totalorder %v436_v10, %v437_v11 }
 0x685   :  { %v439_v14 = vsel %vm438_vm2, %v436_v10, %v437_v11  ;;  %v263_v27 = vcvt.s32.f32 %v261_v46  ;;  %v262_v54 = vcvt.s32.f32 %v260_v55  ;;  %v294_v10 = vsel %vm293_vm13, %v783_v6, 8 }
 0x686   :  { %v440_v17 = vrot.slane %v439_v14, 2  ;;  %v295_v11 = vsel %vm26_vm0, %v294_v10, 2147483647 }
 0x687   :  { %v296_v13 = vrot.slane %v295_v11, 4 }
 0x688   :  { %vm441_vm3 = vcmp.lt.s32.totalorder %v439_v14, %v440_v17 }
 0x689   :  { %v691_v57 = vpop.eup %690  ;;  %v442_v18 = vsel %vm441_vm3, %v439_v14, %v440_v17 }
 0x68a   :  { %v449_v59 = vsel %vm426_vm15, %v691_v57, 0.0  ;;  %v443_v19 = vrot.slane %v442_v18, 1 }
 0x68b   :  { %v450_v60 = vrot.slane %v449_v59, 4 }
 0x68c   :  { %vm444_vm4 = vcmp.lt.s32.totalorder %v442_v18, %v443_v19 }
 0x68d   :  { %v451_v62 = vadd.f32 %v450_v60, %v449_v59  ;;  %v988_v26 = vsel %vm444_vm4, %v442_v18, %v443_v19 }
 0x68e   :  { %vm472_vm5 = vcmp.eq.s32.totalorder %v783_v6, %v988_v26 }
 0x68f   :  { %v452_v63 = vrot.slane %v451_v62, 2 }
 0x691   :  { %v453_v1 = vadd.f32 %v452_v63, %v451_v62 }
 0x693   :  { %v454_v2 = vrot.slane %v453_v1, 1 }
 0x695   :  { %v455_v0 = vadd.f32 %v454_v2, %v453_v1 }
 0x697   :  { %692 = vlog2.f32 %v455_v0 }
 0x69d   :  { %v693_v20 = vpop.eup %692 }
 0x69e   :  { %v457_v4 = vmul.f32 0.6931472, %v693_v20 }
 0x6a0   :  { %v984_v8 = vadd.f32 %v457_v4, %v433_v52 }
 0x6d5   :  { %v411_v24 = vpop.xlane.xlu0 %410 }
 0x6d6   :  { %v412_v28 = vcvt.f32.s32 %v411_v24 }
 0x6d8   :  { %v415_v29 = vadd.s32 %v414_v25, %v412_v28 }
 0x6da   :  { %v473_v15 = vsel %vm472_vm5, %v415_v29, 4294967295 }
 0x6db   :  { %v474_v31 = vsel %vm426_vm15, %v473_v15, 2147483648 }
 0x6dc   :  { %v475_v35 = vrot.slane %v474_v31, 4 }
 0x6dd   :  { %v336_v36 = vpop.xlane.xlu0 %335 }
 0x6de   :  { %vm476_vm3 = vcmp.gt.s32.totalorder %v474_v31, %v475_v35  ;;  %vm337_vm4 = vcmp.eq.f32.partialorder %v334_v42, %v336_v36  ;;  %v365_v42 = vsel %vm364_vm14, %v783_v6, 8  ;;  %v342_v17 = vcvt.f32.s32 %v336_v36 }
 0x6df   :  { %v338_v39 = vsel %vm337_vm4, %v333_v38, inf  ;;  %v477_v43 = vsel %vm476_vm3, %v474_v31, %v475_v35  ;;  %v366_v7 = vsel %vm26_vm0, %v365_v42, 2147483647 }
 0x6e0   :  { %339 = vmin.xlane.f32.xlu0 %v338_v39  ;;  %v478_v41 = vrot.slane %v477_v43, 2  ;;  %v367_v48 = vrot.slane %v366_v7, 4  ;;  %v343_v28 = vshll.u32 %v342_v17, 16 }
 0x6e2   :  { %vm479_vm2 = vcmp.gt.s32.totalorder %v477_v43, %v478_v41  ;;  %vm368_vm15 = vcmp.lt.s32.totalorder %v366_v7, %v367_v48 }
 0x6e3   :  { %v480_v45 = vsel %vm479_vm2, %v477_v43, %v478_v41  ;;  %v369_v49 = vsel %vm368_vm15, %v366_v7, %v367_v48 }
 0x6e4   :  { %v481_v37 = vrot.slane %v480_v45, 1  ;;  %v370_v50 = vrot.slane %v369_v49, 2 }
 0x6e6   :  { %vm482_vm5 = vcmp.gt.s32.totalorder %v480_v45, %v481_v37  ;;  %vm371_vm1 = vcmp.lt.s32.totalorder %v369_v49, %v370_v50 }
 0x6e7   :  { %v483_v34 = vsel %vm482_vm5, %v480_v45, %v481_v37  ;;  %v372_v51 = vsel %vm371_vm1, %v369_v49, %v370_v50  ;;  %vm297_vm5 = vcmp.lt.s32.totalorder %v295_v11, %v296_v13 }
 0x6e8   :  { %486 = vperm.xlu1 %648, %v483_v34   ;;  %264 = vmin.xlane.f32.xlu0 %v263_v27  ;;  %v373_v53 = vrot.slane %v372_v51, 1  ;;  %v298_v18 = vsel %vm297_vm5, %v295_v11, %v296_v13  ;;  %vm186_vm5 = vcmp.eq.f32.partialorder %v890_v56, %v898_v61 }
 0x6e9   :  { %v299_v29 = vrot.slane %v298_v18, 2  ;;  %v187_v34 = vsel %vm186_vm5, %v781_v5, 8 }
 0x6ea   :  { %vm374_vm3 = vcmp.lt.s32.totalorder %v372_v51, %v373_v53  ;;  %v188_v49 = vsel %vm26_vm0, %v187_v34, 2147483647  ;;  %v152_v34 = vsel %vm151_vm11, %v783_v6, 8 }
 0x6eb   :  { %v375_v59 = vsel %vm374_vm3, %v372_v51, %v373_v53  ;;  %vm300_vm13 = vcmp.lt.s32.totalorder %v298_v18, %v299_v29  ;;  %v190_v50 = vshra.s32 %v188_v49, 16  ;;  %v189_v23 = vand.u32 65535, %v188_v49 }
 0x6ec   :  { %v301_v31 = vsel %vm300_vm13, %v298_v18, %v299_v29 }
 0x6ed   :  { %v302_v36 = vrot.slane %v301_v31, 1  ;;  %v192_v51 = vcvt.s32.f32 %v190_v50  ;;  %v191_v11 = vcvt.s32.f32 %v189_v23 }
 0x753   :  { %v340_v52 = vpop.xlane.xlu0 %339 }
 0x754   :  { %v341_v19 = vcvt.f32.s32 %v340_v52  ;;  %v223_v52 = vsel %vm222_vm12, %v783_v6, 8  ;;  %vm115_vm12 = vcmp.eq.f32.partialorder %v861_v16, %v869_v22 }
 0x755   :  { %v224_v56 = vsel %vm26_vm0, %v223_v52, 2147483647 }
 0x756   :  { %v344_v15 = vadd.s32 %v343_v28, %v341_v19  ;;  %v225_v61 = vrot.slane %v224_v56, 4 }
 0x758   :  { %vm226_vm13 = vcmp.lt.s32.totalorder %v224_v56, %v225_v61 }
 0x75a   :  { %v1002_v57 = vpop.permute.xlu1 %486 }
 0x75b   :  { %vm489_vm4 = vcmp.eq.s32.totalorder %v781_v5, %v1002_v57  ;;  %v1006_v47 = vpop.xlane.xlu0 %264 }
 0x75c   :  { %v490_v60 = vsel %vm489_vm4, %v375_v59, 4294967295  ;;  %vm266_vm14 = vcmp.eq.f32.partialorder %v263_v27, %v1006_v47  ;;  %vm303_vm4 = vcmp.lt.s32.totalorder %v301_v31, %v302_v36  ;;  %v271_v59 = vcvt.f32.s32 %v1006_v47 }
 0x75d   :  { %v267_v62 = vsel %vm266_vm14, %v262_v54, inf  ;;  %v491_v63 = vsel %vm26_vm0, %v490_v60, 2147483648  ;;  %v304_v44 = vsel %vm303_vm4, %v301_v31, %v302_v36  ;;  %v227_v54 = vsel %vm226_vm13, %v224_v56, %v225_v61 }
 0x75e   :  { %268 = vmin.xlane.f32.xlu1 %v267_v62  ;;  %v493_v1 = vshra.s32 %v491_v63, 16  ;;  %v492_v0 = vand.u32 65535, %v491_v63 }
 0x760   :  { %v495_v2 = vcvt.s32.f32 %v493_v1  ;;  %v494_v4 = vcvt.s32.f32 %v492_v0  ;;  %v228_v0 = vrot.slane %v227_v54, 2 }
 0x762   :  { %496 = vmax.xlane.f32.xlu2 %v495_v2 }
 0x7d1   :  { %v269_v53 = vpop.xlane.xlu1 %268 }
 0x7d2   :  { %v270_v60 = vcvt.f32.s32 %v269_v53 }
 0x7d5   :  { %v497_v20 = vpop.xlane.xlu2 %496 }
 0x7d6   :  { %vm498_vm2 = vcmp.eq.f32.partialorder %v495_v2, %v497_v20  ;;  %v503_v14 = vcvt.f32.s32 %v497_v20  ;;  %v272_v2 = vshll.u32 %v271_v59, 16 }
 0x7d7   :  { %v499_v9 = vsel %vm498_vm2, %v494_v4, -inf }
 0x7d8   :  { %500 = vmax.xlane.f32.xlu2 %v499_v9  ;;  %v504_v24 = vshll.u32 %v503_v14, 16  ;;  %v273_v12 = vadd.s32 %v272_v2, %v270_v60  ;;  %v116_v9 = vsel %vm115_vm12, %v781_v5, 8 }
 0x7d9   :  { %v117_v18 = vsel %vm26_vm0, %v116_v9, 2147483647 }
 0x7da   :  { %v119_v19 = vshra.s32 %v117_v18, 16 }
 0x84b   :  { %v501_v21 = vpop.xlane.xlu2 %500 }
 0x84c   :  { %v502_v25 = vcvt.f32.s32 %v501_v21 }
 0x84e   :  { %v1015_v30 = vadd.s32 %v504_v24, %v502_v25  ;;  %v121_v25 = vcvt.s32.f32 %v119_v19 }
 0x850   :  { %vm507_vm15 = vcmp.eq.s32.totalorder %v783_v6, %v1015_v30 }
 0x851   :  { %v508_v58 = vsel %vm507_vm15, %v344_v15, 4294967295 }
 0x852   :  { %v509_v3 = vrot.slane %v508_v58, 4 }
 0x854   :  { %vm510_vm1 = vcmp.gt.s32.totalorder %v508_v58, %v509_v3 }
 0x855   :  { %v511_v35 = vsel %vm510_vm1, %v508_v58, %v509_v3 }
 0x856   :  { %v512_v32 = vrot.slane %v511_v35, 2 }
 0x858   :  { %vm513_vm3 = vcmp.gt.s32.totalorder %v511_v35, %v512_v32 }
 0x859   :  { %v514_v38 = vsel %vm513_vm3, %v511_v35, %v512_v32  ;;  %vm229_vm3 = vcmp.lt.s32.totalorder %v227_v54, %v228_v0  ;;  %v118_v32 = vand.u32 65535, %v117_v18 }
 0x85a   :  { %v515_v39 = vrot.slane %v514_v38, 1  ;;  %v230_v13 = vsel %vm229_vm3, %v227_v54, %v228_v0 }
 0x85b   :  { %v231_v22 = vrot.slane %v230_v13, 1 }
 0x85c   :  { %vm516_vm14 = vcmp.gt.s32.totalorder %v514_v38, %v515_v39 }
 0x85d   :  { %v1019_v43 = vsel %vm516_vm14, %v514_v38, %v515_v39  ;;  %vm232_vm5 = vcmp.lt.s32.totalorder %v230_v13, %v231_v22  ;;  %v120_v38 = vcvt.s32.f32 %v118_v32 }
 0x85e   :  { %vm519_vm2 = vcmp.eq.s32.totalorder %v781_v5, %v1019_v43  ;;  %v233_v29 = vsel %vm232_vm5, %v230_v13, %v231_v22 }
 0x85f   :  { %v520_v41 = vsel %vm519_vm2, %v304_v44, 4294967295 }
 0x860   :  { %v521_v46 = vsel %vm26_vm0, %v520_v41, 2147483648 }
 0x861   :  { %v523_v45 = vshra.s32 %v521_v46, 16  ;;  %v522_v27 = vand.u32 65535, %v521_v46 }
 0x863   :  { %v525_v37 = vcvt.s32.f32 %v523_v45  ;;  %v524_v7 = vcvt.s32.f32 %v522_v27 }
 0x865   :  { %526 = vmax.xlane.f32.xlu2 %v525_v37 }
 0x8d8   :  { %v527_v42 = vpop.xlane.xlu2 %526 }
 0x8d9   :  { %vm528_vm15 = vcmp.eq.f32.partialorder %v525_v37, %v527_v42  ;;  %v533_v55 = vcvt.f32.s32 %v527_v42  ;;  %v459_v37 = vmul.f32 1.442695, %v984_v8  ;;  %v153_v42 = vsel %vm26_vm0, %v152_v34, 2147483647 }
 0x8da   :  { %v529_v48 = vsel %vm528_vm15, %v524_v7, -inf  ;;  %v154_v7 = vrot.slane %v153_v42, 4 }
 0x8db   :  { %530 = vmax.xlane.f32.xlu2 %v529_v48  ;;  %v534_v63 = vshll.u32 %v533_v55, 16  ;;  %694 = vpow2.f32 %v459_v37 }
 0x8dc   :  { %vm155_vm3 = vcmp.lt.s32.totalorder %v153_v42, %v154_v7 }
 0x8e1   :  { %v695_v27 = vpop.eup %694 }
 0x8e3   :  { %193 = vmin.xlane.f32.xlu2 %v192_v51 }
 0x94e   :  { %v531_v62 = vpop.xlane.xlu2 %530 }
 0x94f   :  { %v532_v1 = vcvt.f32.s32 %v531_v62 }
 0x951   :  { %v1034_v20 = vadd.s32 %v534_v63, %v532_v1 }
 0x953   :  { %vm537_vm1 = vcmp.eq.s32.totalorder %v783_v6, %v1034_v20 }
 0x954   :  { %v538_v4 = vsel %vm537_vm1, %v273_v12, 4294967295 }
 0x955   :  { %v539_v47 = vrot.slane %v538_v4, 4 }
 0x956   :  { %v194_v10 = vpop.xlane.xlu2 %193 }
 0x957   :  { %vm540_vm4 = vcmp.gt.s32.totalorder %v538_v4, %v539_v47  ;;  %vm195_vm14 = vcmp.eq.f32.partialorder %v192_v51, %v194_v10  ;;  %v200_v50 = vcvt.f32.s32 %v194_v10  ;;  %v156_v51 = vsel %vm155_vm3, %v153_v42, %v154_v7 }
 0x958   :  { %v541_v14 = vsel %vm540_vm4, %v538_v4, %v539_v47  ;;  %v196_v17 = vsel %vm195_vm14, %v191_v11, inf  ;;  %vm465_vm4 = vcmask 0   ;;  %v157_v59 = vrot.slane %v156_v51, 2 }
 0x959   :  { %v542_v16 = vrot.slane %v541_v14, 2  ;;  %197 = vmin.xlane.f32.xlu2 %v196_v17  ;;  %v201_v55 = vshll.u32 %v200_v50, 16 }
 0x95a   :  { %vm158_vm14 = vcmp.lt.s32.totalorder %v156_v51, %v157_v59 }
 0x95b   :  { %vm543_vm2 = vcmp.gt.s32.totalorder %v541_v14, %v542_v16  ;;  %v159_v62 = vsel %vm158_vm14, %v156_v51, %v157_v59  ;;  %vm484_vm14 = vcmp.eq.s32.totalorder %v781_v5, 8 }
 0x95c   :  { %v544_v21 = vsel %vm543_vm2, %v541_v14, %v542_v16  ;;  %v160_v2 = vrot.slane %v159_v62, 1 }
 0x95d   :  { %v545_v24 = vrot.slane %v544_v21, 1 }
 0x95f   :  { %vm546_vm15 = vcmp.gt.s32.totalorder %v544_v21, %v545_v24 }
 0x960   :  { %v1042_v28 = vsel %vm546_vm15, %v544_v21, %v545_v24  ;;  %vm161_vm15 = vcmp.lt.s32.totalorder %v159_v62, %v160_v2 }
 0x961   :  { %122 = vmin.xlane.f32.xlu2 %v121_v25  ;;  %vm549_vm13 = vcmp.eq.s32.totalorder %v781_v5, %v1042_v28  ;;  %v162_v4 = vsel %vm161_vm15, %v159_v62, %v160_v2 }
 0x962   :  { %v550_v15 = vsel %vm549_vm13, %v233_v29, 4294967295 }
 0x963   :  { %v551_v58 = vsel %vm26_vm0, %v550_v15, 2147483648 }
 0x964   :  { %v553_v3 = vshra.s32 %v551_v58, 16  ;;  %v552_v44 = vand.u32 65535, %v551_v58 }
 0x966   :  { %v555_v31 = vcvt.s32.f32 %v553_v3  ;;  %v554_v46 = vcvt.s32.f32 %v552_v44 }
 0x968   :  { %556 = vmax.xlane.f32.xlu0 %v555_v31 }
 0x9cc   :  { %v198_v35 = vpop.xlane.xlu2 %197 }
 0x9cd   :  { %v199_v52 = vcvt.f32.s32 %v198_v35 }
 0x9cf   :  { %v202_v33 = vadd.s32 %v201_v55, %v199_v52 }
 0x9d4   :  { %v1047_v36 = vpop.xlane.xlu2 %122 }
 0x9d5   :  { %vm124_vm12 = vcmp.eq.f32.partialorder %v121_v25, %v1047_v36  ;;  %v129_v22 = vcvt.f32.s32 %v1047_v36 }
 0x9d6   :  { %v125_v39 = vsel %vm124_vm12, %v120_v38, inf }
 0x9d7   :  { %126 = vmin.xlane.f32.xlu2 %v125_v39  ;;  %v130_v29 = vshll.u32 %v129_v22, 16 }
 0x9db   :  { %v557_v41 = vpop.xlane.xlu0 %556 }
 0x9dc   :  { %vm558_vm1 = vcmp.eq.f32.partialorder %v555_v31, %v557_v41  ;;  %v563_v49 = vcvt.f32.s32 %v557_v41 }
 0x9dd   :  { %v559_v45 = vsel %vm558_vm1, %v554_v46, -inf }
 0x9de   :  { %560 = vmax.xlane.f32.xlu0 %v559_v45  ;;  %v564_v56 = vshll.u32 %v563_v49, 16 }
 0x9ef   :  { %462 = vrot.lane.b32.xlu2 %v695_v27, %s750_s0 }
 0xa4a   :  { %v127_v48 = vpop.xlane.xlu2 %126 }
 0xa4b   :  { %v128_v19 = vcvt.f32.s32 %v127_v48 }
 0xa4d   :  { %v131_v58 = vadd.s32 %v130_v29, %v128_v19 }
 0xa51   :  { %v561_v8 = vpop.xlane.xlu0 %560 }
 0xa52   :  { %v562_v61 = vcvt.f32.s32 %v561_v8  ;;  %v463_v53 = vpop.permute.xlu2 %462 }
 0xa53   :  { %466 = vst.msk [vmem:[#allocation4] sm:$0x1] %vm465_vm4, %v463_v53 }
 0xa54   :  { %v1056_v54 = vadd.s32 %v564_v56, %v562_v61  ;;  %632 = dma.vmem_to_hbm [thread:$0]  %s628_s18, 16, %s630_s21, [#allocation5]  }
 0xa56   :  { %vm567_vm11 = vcmp.eq.s32.totalorder %v783_v6, %v1056_v54 }
 0xa57   :  { %v568_v40 = vsel %vm567_vm11, %v202_v33, 4294967295  ;;  %vm467_vm11 = vcmp.eq.s32.totalorder %v781_v5, 9 }
 0xa58   :  { %v569_v60 = vrot.slane %v568_v40, 4 }
 0xa5a   :  { %vm570_vm2 = vcmp.gt.s32.totalorder %v568_v40, %v569_v60 }
 0xa5b   :  { %v571_v63 = vsel %vm570_vm2, %v568_v40, %v569_v60 }
 0xa5c   :  { %v572_v1 = vrot.slane %v571_v63, 2 }
 0xa5e   :  { %vm573_vm5 = vcmp.gt.s32.totalorder %v571_v63, %v572_v1 }
 0xa5f   :  { %v574_v0 = vsel %vm573_vm5, %v571_v63, %v572_v1 }
 0xa60   :  { %v575_v12 = vrot.slane %v574_v0, 1 }
 0xa62   :  { %vm576_vm13 = vcmp.gt.s32.totalorder %v574_v0, %v575_v12 }
 0xa63   :  { %v577_v23 = vsel %vm576_vm13, %v574_v0, %v575_v12 }
 0xa64   :  { %vm579_vm12 = vcmp.eq.s32.totalorder %v781_v5, %v577_v23 }
 0xa65   :  { %v580_v47 = vsel %vm579_vm12, %v162_v4, 4294967295 }
 0xa66   :  { %v581_v9 = vsel %vm26_vm0, %v580_v47, 2147483648 }
 0xa67   :  { %v583_v10 = vshra.s32 %v581_v9, 16  ;;  %v582_v13 = vand.u32 65535, %v581_v9 }
 0xa69   :  { %v585_v11 = vcvt.s32.f32 %v583_v10  ;;  %v584_v17 = vcvt.s32.f32 %v582_v13 }
 0xa6b   :  { %586 = vmax.xlane.f32.xlu0 %v585_v11 }
 0xade   :  { %v587_v14 = vpop.xlane.xlu0 %586 }
 0xadf   :  { %vm588_vm1 = vcmp.eq.f32.partialorder %v585_v11, %v587_v14  ;;  %v593_v16 = vcvt.f32.s32 %v587_v14 }
 0xae0   :  { %v589_v18 = vsel %vm588_vm1, %v584_v17, -inf }
 0xae1   :  { %590 = vmax.xlane.f32.xlu0 %v589_v18  ;;  %v594_v24 = vshll.u32 %v593_v16, 16 }
 0xaf5   :  { %469 = vperm.xlu0 %649, %v988_v26  }
 0xb54   :  { %v591_v21 = vpop.xlane.xlu0 %590 }
 0xb55   :  { %v592_v25 = vcvt.f32.s32 %v591_v21 }
 0xb57   :  { %v595_v15 = vadd.s32 %v594_v24, %v592_v25 }
 0xb59   :  { %vm597_vm0 = vcmp.eq.s32.totalorder %v783_v6, %v595_v15 }
 0xb5a   :  { %v598_v3 = vsel %vm597_vm0, %v131_v58, 4294967295 }
 0xb5b   :  { %v599_v31 = vrot.slane %v598_v3, 4 }
 0xb5d   :  { %vm600_vm3 = vcmp.gt.s32.totalorder %v598_v3, %v599_v31 }
 0xb5e   :  { %v601_v35 = vsel %vm600_vm3, %v598_v3, %v599_v31 }
 0xb5f   :  { %v602_v32 = vrot.slane %v601_v35, 2 }
 0xb61   :  { %vm603_vm4 = vcmp.gt.s32.totalorder %v601_v35, %v602_v32 }
 0xb62   :  { %v604_v26 = vsel %vm603_vm4, %v601_v35, %v602_v32 }
 0xb63   :  { %v605_v44 = vrot.slane %v604_v26, 1 }
 0xb65   :  { %vm606_vm2 = vcmp.gt.s32.totalorder %v604_v26, %v605_v44 }
 0xb67   :  { %v470_v36 = vpop.permute.xlu0 %469 }
 0xb68   :  { %v471_v38 = vsel %vm467_vm11, %v470_v36, 0 }
 0xb69   :  { %v488_v39 = vsel %vm484_vm14, %v1002_v57, %v471_v38 }
 0xb6a   :  { %v506_v6 = vsel %vm73_vm10, %v1015_v30, %v488_v39  ;;  %vm609_vm10 = vcmask 73728  }
 0xb6b   :  { %v518_v41 = vsel %vm66_vm9, %v1019_v43, %v506_v6  ;;  %vm1104_vm9 = vcmp.eq.s32.totalorder %v781_v5, 2 }
 0xb6c   :  { %v536_v46 = vsel %vm59_vm8, %v1034_v20, %v518_v41  ;;  %vm1105_vm8 = vcmp.eq.s32.totalorder %v781_v5, 1  ;;  %v607_v20 = vsel %vm606_vm2, %v604_v26, %v605_v44 }
 0xb6d   :  { %v548_v45 = vsel %vm52_vm7, %v1042_v28, %v536_v46  ;;  %vm1106_vm7 = vcmp.eq.s32.totalorder %v781_v5, 0 }
 0xb6e   :  { %v566_v57 = vsel %vm45_vm6, %v1056_v54, %v548_v45 }
 0xb6f   :  { %v578_v30 = vsel %vm1104_vm9, %v577_v23, %v566_v57 }
 0xb70   :  { %v596_v43 = vsel %vm1105_vm8, %v595_v15, %v578_v30 }
 0xb71   :  { %v608_v28 = vsel %vm1106_vm7, %v607_v20, %v596_v43 }
 0xb72   :  { %610 = vst.msk [vmem:[#allocation2] sm:$0x1] %vm609_vm10, %v608_v28 }
 0xb73   :  { %621 = dma.vmem_to_hbm [thread:$0]  %s617_s22, 16, %s619_s25, [#allocation3]  }
 0xb74   :  { %744 = dma.done.wait [#allocation3], 16  }
 0xb75   :  { %745 = vsyncadd [#allocation3], 4294967280 }
 0xb76   :  { %746 = dma.done.wait [#allocation5], 16  }
 0xb77   :  { %747 = vsyncadd [#allocation5], 4294967280 }
 0xb78   :  { %641 = vsyncpa [#allocation3], 1 }
 0xb79   :  { %642 = vsyncpa [#allocation5], 1 }

</bundles_post_ra>
